<compile_context>
chip_gen: v5e
topology: v5e:2x2
jax: 0.10.0
libtpu: 0.0.40
codegen_flags: <defaults>
</compile_context>

<pallas_src>
import functools

import jax
import jax.numpy as jnp
from jax.experimental import pallas as pl
from jax.experimental.pallas import tpu as pltpu


H1_LOGICAL, H2_LOGICAL = 400, 300   # PyTorch module hidden sizes
H1_PAD, H2_PAD = 512, 384           # lane-aligned (multiples of 128)
AD_PAD = 128                        # lane-dense output width


def _actor_kernel(x_ref, w1_ref, b1_ref, w2_ref, b2_ref, w3_ref, b3_ref,
                  out_ref, *, sd, phi, max_action):
    x = x_ref[...]                                                 # (TB, D_IN) f32

    # Layer 1: relu(x @ W1 + b1)      (W1 f32, exact)
    h1 = jnp.dot(x, w1_ref[...], preferred_element_type=jnp.float32) + b1_ref[...]
    h1 = jnp.maximum(h1, 0.0).astype(jnp.bfloat16)

    # Layer 2: relu(h1 @ W2 + b2)     (W2 bf16, f32 accumulate)
    h2 = jnp.dot(h1, w2_ref[...], preferred_element_type=jnp.float32) + b2_ref[...]
    h2 = jnp.maximum(h2, 0.0)

    # Layer 3 + epilogue (f32): phi * max_action * tanh(h2 @ W3 + b3)
    # W3/b3 are zero-padded to AD_PAD columns, so tail lanes come out exactly 0.
    a3 = jnp.dot(h2, w3_ref[...], preferred_element_type=jnp.float32) + b3_ref[...]
    a3 = (phi * max_action) * jnp.tanh(a3)                         # (TB, AD_PAD)

    # Residual: `action` == x[:, sd:sd+ad].  Recover it via an exact 0/1
    # selector matmul that also places it lane-dense into (TB, AD_PAD):
    #   R[i, j] = 1 iff i == sd + j   (rows sd..d_in-1 map to lanes 0..ad-1).
    d_in = x_ref.shape[1]
    ad_pad = out_ref.shape[1]
    row = jax.lax.broadcasted_iota(jnp.int32, (d_in, ad_pad), 0)
    col = jax.lax.broadcasted_iota(jnp.int32, (d_in, ad_pad), 1)
    sel = (row == col + sd).astype(jnp.float32)
    act = jnp.dot(x, sel, preferred_element_type=jnp.float32)      # (TB, AD_PAD)

    out_ref[...] = jnp.clip(a3 + act, -max_action, max_action).astype(out_ref.dtype)


def _pick_tile(batch, tile_b):
    """Batch-tile size: multiple of 8, <= 1024, and >= 2 grid steps when B >= 16
    (so v7x can shard the 'parallel' axis across both TensorCores)."""
    tb = min(tile_b, 1024, batch)
    if batch >= 16:
        half = -(-batch // 2)            # ceil(B/2)
        half = -(-half // 8) * 8         # round up to a multiple of 8
        tb = min(tb, half)
    tb = max(8, (tb // 8) * 8)
    return tb


def actor_forward(state, action, kernel_params, *, phi, max_action, tile_b=512):
    """kernel_params: padded params from prepare_kernel_params()."""
    B, SD = state.shape
    _, AD = action.shape
    w1, b1, w2, b2, w3, b3 = kernel_params
    D_IN = SD + AD
    H1P = w1.shape[1]
    H2P = w2.shape[1]
    ADP = w3.shape[1]

    # Fused layer-1 input: concat on the wrapper side; action travels as the
    # tail columns of x (no separate action input stream).
    x = jnp.concatenate([state, action], axis=1)                   # (B, D_IN) f32

    tb = _pick_tile(B, tile_b)
    n_tiles = pl.cdiv(B, tb)
    Bp = n_tiles * tb
    if Bp != B:
        x = jnp.pad(x, ((0, Bp - B), (0, 0)))

    kernel = functools.partial(_actor_kernel, sd=SD, phi=phi, max_action=max_action)

    flops = 2 * B * (D_IN * H1_LOGICAL + H1_LOGICAL * H2_LOGICAL
                     + H2_LOGICAL * AD + D_IN * AD)
    param_bytes = sum(int(p.size) * p.dtype.itemsize for p in (w1, b1, w2, b2, w3, b3))
    bytes_accessed = param_bytes + int(x.size) * 4 + Bp * ADP * 4
    cost = pl.CostEstimate(flops=flops, transcendentals=Bp * ADP,
                           bytes_accessed=bytes_accessed)

    resident = functools.partial(pl.BlockSpec, index_map=lambda i: (0, 0),
                                 pipeline_mode=pl.Buffered(1))

    out = pl.pallas_call(
        kernel,
        out_shape=jax.ShapeDtypeStruct((Bp, ADP), jnp.float32),
        grid=(n_tiles,),
        in_specs=[
            pl.BlockSpec((tb, D_IN), lambda i: (i, 0)),   # x tile (streams)
            resident((D_IN, H1P)),                        # W1 (resident, f32)
            resident((1, H1P)),                           # b1
            resident((H1P, H2P)),                         # W2 (resident, bf16)
            resident((1, H2P)),                           # b2
            resident((H2P, ADP)),                         # W3 (resident, f32)
            resident((1, ADP)),                           # b3
        ],
        out_specs=pl.BlockSpec((tb, ADP), lambda i: (i, 0)),   # lane-dense output
        compiler_params=pltpu.CompilerParams(
            dimension_semantics=("parallel",)),
        cost_estimate=cost,
    )(x, w1, b1, w2, b2, w3, b3)

    return out[:B, :AD]


def init_params(key, state_dim, action_dim, h1=H1_LOGICAL, h2=H2_LOGICAL):
    """Logical (unpadded, f32) params mimicking PyTorch Linear default init."""
    ks = jax.random.split(key, 6)
    d_in = state_dim + action_dim

    def u(k, shape, fan_in):
        lim = 1.0 / jnp.sqrt(fan_in)
        return jax.random.uniform(k, shape, jnp.float32, -lim, lim)

    w1 = u(ks[0], (d_in, h1), d_in)
    b1 = u(ks[1], (1, h1), d_in)
    w2 = u(ks[2], (h1, h2), h1)
    b2 = u(ks[3], (1, h2), h1)
    w3 = u(ks[4], (h2, action_dim), h2)
    b3 = u(ks[5], (1, action_dim), h2)
    return (w1, b1, w2, b2, w3, b3)


def prepare_kernel_params(params, h1_pad=H1_PAD, h2_pad=H2_PAD, ad_pad=AD_PAD):
    """Zero-pad hidden dims (400->512, 300->384) and the output dim (AD->128).

    Zero columns in W1/b1 give zero activations through ReLU; zero rows in
    W2/W3 contribute nothing; zero output columns of W3/b3 yield exact zeros
    in the padded output lanes -- semantics unchanged.  Only the dominant W2
    is shipped in bf16; W1/W3 and all biases stay f32 (f32 accumulation)."""
    w1, b1, w2, b2, w3, b3 = params
    d_in, h1 = w1.shape
    h2, ad = w3.shape
    w1p = jnp.zeros((d_in, h1_pad), jnp.float32).at[:, :h1].set(w1)
    b1p = jnp.zeros((1, h1_pad), jnp.float32).at[:, :h1].set(b1)
    w2p = jnp.zeros((h1_pad, h2_pad), jnp.float32).at[:h1, :h2].set(w2).astype(jnp.bfloat16)
    b2p = jnp.zeros((1, h2_pad), jnp.float32).at[:, :h2].set(b2)
    w3p = jnp.zeros((h2_pad, ad_pad), jnp.float32).at[:h2, :ad].set(w3)
    b3p = jnp.zeros((1, ad_pad), jnp.float32).at[:, :ad].set(b3)
    return (w1p, b1p, w2p, b2p, w3p, b3p)


def actor_forward_ref(state, action, params, *, phi, max_action):
    """Pure-JAX f32 reference (unpadded weights) for correctness check."""
    w1, b1, w2, b2, w3, b3 = params
    x = jnp.concatenate([state, action], axis=1)
    h1 = jnp.maximum(x @ w1 + b1, 0.0)
    h2 = jnp.maximum(h1 @ w2 + b2, 0.0)
    a3 = phi * max_action * jnp.tanh(h2 @ w3 + b3)
    return jnp.clip(a3 + action, -max_action, max_action)


if __name__ == "__main__":
    B = 64
    STATE_DIM = 16
    ACTION_DIM = 8
    MAX_ACTION = 1.0
    PHI = 0.05

    key = jax.random.PRNGKey(0)
    k_s, k_a, k_p = jax.random.split(key, 3)
    state = jax.random.normal(k_s, (B, STATE_DIM), jnp.float32)
    action = jnp.clip(jax.random.normal(k_a, (B, ACTION_DIM), jnp.float32),
                      -MAX_ACTION, MAX_ACTION)

    params = init_params(k_p, STATE_DIM, ACTION_DIM)
    kparams = prepare_kernel_params(params)

    # default tile selection gives grid=(2,) at B=64 (tb=32): exercises
    # multi-step batch tiling and the >=2-grid-steps rule.
    out = actor_forward(state, action, kparams, phi=PHI, max_action=MAX_ACTION)
    out = jax.block_until_ready(out)

    ref = actor_forward_ref(state, action, params, phi=PHI, max_action=MAX_ACTION)
    assert out.shape == (B, ACTION_DIM)
    max_err = float(jnp.max(jnp.abs(out - ref)))
    # Only W2 is bf16 (f32 accumulation, exact residual) -> tight agreement.
    assert jnp.allclose(out, ref, atol=1e-2, rtol=1e-2), \
        f"mismatch vs JAX reference (max abs err {max_err})"

    print("KERNEL_OK")
</pallas_src>

<mosaic_0001>
module attributes {stable_mosaic.version = 11 : i64} {
  func.func @_actor_kernel(%arg0: i32, %arg1: memref<32x24xf32, #tpu.memory_space<vmem>>, %arg2: memref<24x512xf32, #tpu.memory_space<vmem>>, %arg3: memref<1x512xf32, #tpu.memory_space<vmem>>, %arg4: memref<512x384xbf16, #tpu.memory_space<vmem>>, %arg5: memref<1x384xf32, #tpu.memory_space<vmem>>, %arg6: memref<384x128xf32, #tpu.memory_space<vmem>>, %arg7: memref<1x128xf32, #tpu.memory_space<vmem>>, %arg8: memref<32x128xf32, #tpu.memory_space<vmem>>) attributes {dimension_semantics = [#tpu.dimension_semantics<parallel>], iteration_bounds = array<i64: 2>, scalar_prefetch = 0 : i64, scratch_operands = 0 : i64, tpu.core_type = #tpu.core_type<tc>, window_params = [{transform_indices = @transform_0, window_bounds = array<i64: 32, 24>}, {pipeline_mode = #tpu.pipeline_mode<synchronous>, transform_indices = @transform_1, window_bounds = array<i64: 24, 512>}, {pipeline_mode = #tpu.pipeline_mode<synchronous>, transform_indices = @transform_2, window_bounds = array<i64: 1, 512>}, {pipeline_mode = #tpu.pipeline_mode<synchronous>, transform_indices = @transform_3, window_bounds = array<i64: 512, 384>}, {pipeline_mode = #tpu.pipeline_mode<synchronous>, transform_indices = @transform_4, window_bounds = array<i64: 1, 384>}, {pipeline_mode = #tpu.pipeline_mode<synchronous>, transform_indices = @transform_5, window_bounds = array<i64: 384, 128>}, {pipeline_mode = #tpu.pipeline_mode<synchronous>, transform_indices = @transform_6, window_bounds = array<i64: 1, 128>}, {transform_indices = @transform_7, window_bounds = array<i64: 32, 128>}]} {
    %c0 = arith.constant 0 : index
    %c0_0 = arith.constant 0 : index
    %0 = vector.load %arg1[%c0, %c0_0] : memref<32x24xf32, #tpu.memory_space<vmem>>, vector<32x24xf32>
    %c0_1 = arith.constant 0 : index
    %c0_2 = arith.constant 0 : index
    %1 = vector.load %arg2[%c0_1, %c0_2] : memref<24x512xf32, #tpu.memory_space<vmem>>, vector<24x512xf32>
    %cst = arith.constant dense<0.000000e+00> : vector<32x512xf32>
    %2 = tpu.matmul %0, %1, %cst {dimension_numbers = #tpu.dot_dimension_numbers<[1], [0], [0], [1], [0, 0, 1, 1], [], []>} : vector<32x24xf32>, vector<24x512xf32>, vector<32x512xf32> -> vector<32x512xf32>
    %c0_3 = arith.constant 0 : index
    %c0_4 = arith.constant 0 : index
    %3 = vector.load %arg3[%c0_3, %c0_4] : memref<1x512xf32, #tpu.memory_space<vmem>>, vector<1x512xf32>
    %4 = vector.broadcast %3 : vector<1x512xf32> to vector<32x512xf32>
    %5 = arith.addf %2, %4 : vector<32x512xf32>
    %cst_5 = arith.constant 0.000000e+00 : f32
    %6 = vector.broadcast %cst_5 : f32 to vector<32x512xf32>
    %7 = arith.maximumf %5, %6 : vector<32x512xf32>
    %8 = arith.truncf %7 : vector<32x512xf32> to vector<32x512xbf16>
    %c0_6 = arith.constant 0 : index
    %c0_7 = arith.constant 0 : index
    %9 = vector.load %arg4[%c0_6, %c0_7] : memref<512x384xbf16, #tpu.memory_space<vmem>>, vector<512x384xbf16>
    %cst_8 = arith.constant dense<0.000000e+00> : vector<32x384xf32>
    %10 = tpu.matmul %8, %9, %cst_8 {dimension_numbers = #tpu.dot_dimension_numbers<[1], [0], [0], [1], [0, 0, 1, 1], [], []>} : vector<32x512xbf16>, vector<512x384xbf16>, vector<32x384xf32> -> vector<32x384xf32>
    %c0_9 = arith.constant 0 : index
    %c0_10 = arith.constant 0 : index
    %11 = vector.load %arg5[%c0_9, %c0_10] : memref<1x384xf32, #tpu.memory_space<vmem>>, vector<1x384xf32>
    %12 = vector.broadcast %11 : vector<1x384xf32> to vector<32x384xf32>
    %13 = arith.addf %10, %12 : vector<32x384xf32>
    %cst_11 = arith.constant 0.000000e+00 : f32
    %14 = vector.broadcast %cst_11 : f32 to vector<32x384xf32>
    %15 = arith.maximumf %13, %14 : vector<32x384xf32>
    %c0_12 = arith.constant 0 : index
    %c0_13 = arith.constant 0 : index
    %16 = vector.load %arg6[%c0_12, %c0_13] : memref<384x128xf32, #tpu.memory_space<vmem>>, vector<384x128xf32>
    %cst_14 = arith.constant dense<0.000000e+00> : vector<32x128xf32>
    %17 = tpu.matmul %15, %16, %cst_14 {dimension_numbers = #tpu.dot_dimension_numbers<[1], [0], [0], [1], [0, 0, 1, 1], [], []>} : vector<32x384xf32>, vector<384x128xf32>, vector<32x128xf32> -> vector<32x128xf32>
    %c0_15 = arith.constant 0 : index
    %c0_16 = arith.constant 0 : index
    %18 = vector.load %arg7[%c0_15, %c0_16] : memref<1x128xf32, #tpu.memory_space<vmem>>, vector<1x128xf32>
    %19 = vector.broadcast %18 : vector<1x128xf32> to vector<32x128xf32>
    %20 = arith.addf %17, %19 : vector<32x128xf32>
    %21 = math.tanh %20 : vector<32x128xf32>
    %cst_17 = arith.constant 5.000000e-02 : f32
    %22 = vector.broadcast %cst_17 : f32 to vector<32x128xf32>
    %23 = arith.mulf %22, %21 : vector<32x128xf32>
    %24 = tpu.iota {dimensions = array<i32: 0>} : vector<24x128xi32>
    %25 = tpu.iota {dimensions = array<i32: 1>} : vector<24x128xi32>
    %c16_i32 = arith.constant 16 : i32
    %26 = vector.broadcast %c16_i32 : i32 to vector<24x128xi32>
    %27 = arith.addi %25, %26 : vector<24x128xi32>
    %28 = arith.cmpi eq, %24, %27 : vector<24x128xi32>
    %29 = arith.extui %28 : vector<24x128xi1> to vector<24x128xi32>
    %30 = arith.sitofp %29 : vector<24x128xi32> to vector<24x128xf32>
    %cst_18 = arith.constant dense<0.000000e+00> : vector<32x128xf32>
    %31 = tpu.matmul %0, %30, %cst_18 {dimension_numbers = #tpu.dot_dimension_numbers<[1], [0], [0], [1], [0, 0, 1, 1], [], []>} : vector<32x24xf32>, vector<24x128xf32>, vector<32x128xf32> -> vector<32x128xf32>
    %32 = arith.addf %23, %31 : vector<32x128xf32>
    %cst_19 = arith.constant -1.000000e+00 : f32
    %cst_20 = arith.constant 1.000000e+00 : f32
    %33 = vector.broadcast %cst_19 : f32 to vector<32x128xf32>
    %34 = arith.maximumf %33, %32 : vector<32x128xf32>
    %35 = vector.broadcast %cst_20 : f32 to vector<32x128xf32>
    %36 = arith.minimumf %35, %34 : vector<32x128xf32>
    %c0_21 = arith.constant 0 : index
    %c0_22 = arith.constant 0 : index
    %37 = vector.load %arg8[%c0_21, %c0_22] : memref<32x128xf32, #tpu.memory_space<vmem>>, vector<32x128xf32>
    tpu.vector_store %arg8[%c0_21, %c0_22], %36 {strides = array<i32>} : memref<32x128xf32, #tpu.memory_space<vmem>>, vector<32x128xf32>,
    return
  }
  func.func @transform_0(%arg0: i32) -> (i32, i32) {
    %c0_i32 = arith.constant 0 : i32
    %c0_i32_0 = arith.constant 0 : i32
    return %arg0, %c0_i32 : i32, i32
  }
  func.func @transform_1(%arg0: i32) -> (i32, i32) {
    %c0_i32 = arith.constant 0 : i32
    %c0_i32_0 = arith.constant 0 : i32
    %c0_i32_1 = arith.constant 0 : i32
    return %c0_i32, %c0_i32_0 : i32, i32
  }
  func.func @transform_2(%arg0: i32) -> (i32, i32) {
    %c0_i32 = arith.constant 0 : i32
    %c0_i32_0 = arith.constant 0 : i32
    %c0_i32_1 = arith.constant 0 : i32
    return %c0_i32, %c0_i32_0 : i32, i32
  }
  func.func @transform_3(%arg0: i32) -> (i32, i32) {
    %c0_i32 = arith.constant 0 : i32
    %c0_i32_0 = arith.constant 0 : i32
    %c0_i32_1 = arith.constant 0 : i32
    return %c0_i32, %c0_i32_0 : i32, i32
  }
  func.func @transform_4(%arg0: i32) -> (i32, i32) {
    %c0_i32 = arith.constant 0 : i32
    %c0_i32_0 = arith.constant 0 : i32
    %c0_i32_1 = arith.constant 0 : i32
    return %c0_i32, %c0_i32_0 : i32, i32
  }
  func.func @transform_5(%arg0: i32) -> (i32, i32) {
    %c0_i32 = arith.constant 0 : i32
    %c0_i32_0 = arith.constant 0 : i32
    %c0_i32_1 = arith.constant 0 : i32
    return %c0_i32, %c0_i32_0 : i32, i32
  }
  func.func @transform_6(%arg0: i32) -> (i32, i32) {
    %c0_i32 = arith.constant 0 : i32
    %c0_i32_0 = arith.constant 0 : i32
    %c0_i32_1 = arith.constant 0 : i32
    return %c0_i32, %c0_i32_0 : i32, i32
  }
  func.func @transform_7(%arg0: i32) -> (i32, i32) {
    %c0_i32 = arith.constant 0 : i32
    %c0_i32_0 = arith.constant 0 : i32
    return %arg0, %c0_i32 : i32, i32
  }
}

</mosaic_0001>

<bundles_post_ra>
// kernel: tpu_custom_call.1
= control target key start
LH: loop header
LB: loop body
LE: loop exit
PB: predicated region body
PF: predicated region fallthrough
CT: control target
= control target key end

     0   :  { %s2815_s0 = inlined_call_operand.vmem [shape: f32[64,24], index: 0, kind: input, shape index: {}]   ;;  %s2816_s1 = inlined_call_operand.hbm [shape: f32[24,512], index: 1, kind: input, shape index: {}]   ;;  %s2817_s2 = inlined_call_operand.vmem [shape: f32[1,512], index: 2, kind: input, shape index: {}]   ;;  %s2818_s3 = inlined_call_operand.hbm [shape: bf16[512,384], index: 3, kind: input, shape index: {}]   ;;  %s2819_s4 = inlined_call_operand.vmem [shape: f32[1,384], index: 4, kind: input, shape index: {}]   ;;  %s2820_s5 = inlined_call_operand.hbm [shape: f32[384,128], index: 5, kind: input, shape index: {}]   ;;  %s2821_s6 = inlined_call_operand.vmem [shape: f32[1,128], index: 6, kind: input, shape index: {}]   ;;  %s2822_s7 = inlined_call_operand.hbm [shape: f32[64,128], index: 7, kind: output, shape index: {}]  }
   0x1   :  { %2824 = sst [smem:[#allocation14_spill]] %s2816_s1 }
   0x2   :  { %2825 = sst [smem:[#allocation15_spill]] %s2818_s3 }
   0x3   :  { %12 = vsyncpa [#allocation3], 0 }
   0x4   :  { %13 = vsyncpa [#allocation6], 0 }
   0x5   :  { %14 = vsyncpa [#allocation4], 0 }
   0x6   :  { %16 = vsyncpa [#allocation4 + $0x1], 0  ;;  %s2547_s24 = smov 0   ;;  %s2549_s25 = smov 0  }
   0x7   :  { %s2551_s26 = smov 0   ;;  %s2553_s27 = smov 0  }
   0x8 LB: > { %2826 = sst [smem:[#allocation12_spill]] %s2488_s26  ;;  %s2568_s28 = sadd.s32 4294967295, %s2492_s27   ;;  %s2492_s27 = sphi %s2553_s27, %s2838_s27   ;;  %s2488_s26 = sphi %s2551_s26, %s2835_s26   ;;  %s2484_s25 = sphi %s2549_s25, %s2837_s25   ;;  %s2480_s24 = sphi %s2547_s24, %s2836_s24  }
   0x9   : > { %s1714_s29 = sadd.s32 4294967294, %s2492_s27   ;;  %s2572_s30 = sadd.s32 1, %s2492_s27  }
   0xa   : > { %s181_s8 = sadd.s32 1, %s2488_s26  ;;  %s178_s9 = ssub.s32 %s2492_s27, %s2572_s30 }
   0xb   : > { %p191_p0 = scmp.ne.s32.totalorder %s2488_s26, %s2484_s25  ;;  %p179_p1 = scmp.eq.s32.totalorder %s178_s9, 0 }
   0xc   : > { %p192_p2 = scmp.eq.s32.totalorder %s2568_s28, 1  ;;  %p197_p3 = scmp.ne.s32.totalorder %s2484_s25, %s2480_s24 }
   0xd   : > { %p198_p4 = scmp.eq.s32.totalorder %s1714_s29, 1  ;;  %p1715_p7 = scmp.ge.s32.totalorder %s2492_s27, 1 }
   0xe   : > { %s2583_s10 = scalar_select %p179_p1, %s2488_s26, %s181_s8  }
   0xf   : > { %p2585_p5 = por %p192_p2, %p191_p0  ;;  %p2589_p6 = por %p198_p4, %p197_p3 }
  0x10   : > { %2827 = sst [smem:[#allocation13_spill]] %s2583_s10  ;;  %p205_p8 = scmp.lt.s32.totalorder %s2492_s27, 3 }
  0x11   : > { %p2267_p9 = scmp.eq.s32.totalorder %s2568_s28, 0  ;;  %s2831_s3 = sld [smem:[#allocation15_spill]] }
  0x12   : > { %p2596_p10 = pnand %p1715_p7, %p205_p8  ;;  %s2494_s17 = smov [#allocation5]  }
  0x13   : > { %s235_s18 = sshll.u32 %s2494_s17, 4  ;;  %s2833_s1 = sld [smem:[#allocation14_spill]]  ;;  %s236_s18 = int_to_ptr.vmem [resolvable:$true] %s235_s18 }
  0x14   : > { %p2253_p11 = pneg %p2596_p10  ;;  %s2495_s23 = smov 192  }
  0x15   : > { %s2496_s29 = smov 12   ;;  %s2497_s8 = smov [#allocation2]  }
  0x16   : > { %p2607_p12 = pnand %p2267_p9, %p2253_p11  ;;  %s218_s9 = sshll.u32 %s2497_s8, 4  ;;  %s219_s9 = int_to_ptr.vmem [resolvable:$true] %s218_s9 }
  0x17   : > { %s233_s16 = sshll.u32 %s2831_s3, 4  ;;  %s2498_s14 = smov 512   ;;  %s234_s16 = int_to_ptr.hbm [resolvable:$true] %s233_s16 }
  0x18   : > { %2259 = dma.hbm_to_vmem [thread:$0]  (!%p2607_p12), %s234_s16, 12288, %s236_s18, [#allocation6], %s2495_s23, %s2495_s23, %s2496_s29  }
  0x19   : > { %s216_s22 = sshll.u32 %s2833_s1, 4  ;;  %s2499_s15 = smov 32   ;;  %s217_s22 = int_to_ptr.hbm [resolvable:$true] %s216_s22 }
  0x1a   : > { %2256 = dma.hbm_to_vmem [thread:$0]  (!%p2607_p12), %s217_s22, 1536, %s219_s9, [#allocation3], %s2498_s14, %s2498_s14, %s2499_s15  }
  0x1b   : > { %s250_s20 = sshll.u32 %s2820_s5, 4  ;;  %s2500_s21 = smov [#allocation7]   ;;  %s251_s20 = int_to_ptr.hbm [resolvable:$true] %s250_s20 }
  0x1c   : > { %s252_s1 = sshll.u32 %s2500_s21, 4  ;;  %s2501_s10 = smov 128   ;;  %s253_s1 = int_to_ptr.vmem [resolvable:$true] %s252_s1 }
  0x1d   : > { %s2502_s26 = smov 8   ;;  %280 = sbr.rel (%p2596_p10) target bundleno = 568 (0x238), region = 48 }
  0x1e   : > { %2262 = dma.hbm_to_vmem [thread:$0]  (!%p2607_p12), %s251_s20, 6144, %s253_s1, [#allocation6], %s2501_s10, %s2501_s10, %s2502_s26  }
  0x22   : > { %2467 = dma.done.wait (%p2267_p9), [#allocation3], 1536  }
  0x23   : > { %2469 = vsyncadd (%p2267_p9), [#allocation3], 4294965760 }
  0x24   : > { %2471 = dma.done.wait (%p2267_p9), [#allocation6], 18432  }
  0x25   : > { %2473 = vsyncadd (%p2267_p9), [#allocation6], 4294948864  ;;  %s1725_s3 = sshll.u32 %s2568_s28, 2  ;;  %v342_v0 = vld [vmem:[#allocation2 + $0x40] sm:$0xff]  ;;  %v343_v1 = vld [vmem:[#allocation2 + $0x48] sm:$0xff]  ;;  %vm356_vm0 = vcmask 195584  }
  0x26   : > { %p324_p13 = scmp.lt.s32.totalorder %s1725_s3, 7  ;;  %v344_v2 = vld [vmem:[#allocation2 + $0x50] sm:$0xff]  ;;  %382 = vmatpush.msra.mxu0 %v342_v0  ;;  %411 = vmatpush.msra.mxu1 %v343_v1  ;;  %v345_v3 = vld [vmem:[#allocation2 + $0x58] sm:$0xff]  ;;  %v338_v4 = vld [vmem:[#allocation2 + $0x20] sm:$0xff]  ;;  %s320_s8 = sand.u32 1, %s2484_s25  }
  0x27   : > { %v339_v5 = vld [vmem:[#allocation2 + $0x28] sm:$0xff]  ;;  %440 = vmatpush.msra.mxu2 %v344_v2  ;;  %469 = vmatpush.msra.mxu3 %v345_v3  ;;  %v340_v6 = vld [vmem:[#allocation2 + $0x30] sm:$0xff]  ;;  %v341_v7 = vld [vmem:[#allocation2 + $0x38] sm:$0xff]  ;;  %s1724_s9 = sshll.u32 %s320_s8, 5  ;;  %s2238_s15 = sshll.u32 %s2568_s28, 5 }
  0x28   : > { %s2840_s3 = smov (!%p324_p13, %s1725_s3), 7  ;;  %v334_v8 = vld [vmem:[#allocation2] sm:$0xff]  ;;  %383 = vmatpush.msra.mxu0 %v338_v4  ;;  %412 = vmatpush.msra.mxu1 %v339_v5  ;;  %v335_v9 = vld [vmem:[#allocation2 + $0x8] sm:$0xff]  ;;  %v336_v10 = vld [vmem:[#allocation2 + $0x10] sm:$0xff]  ;;  %s2775_s14 = scalar_lea.vmem [#allocation8], %s1724_s9 }
  0x29   : > { %s1726_s1 = sshll.u32 %s2840_s3, 3  ;;  %v337_v11 = vld [vmem:[#allocation2 + $0x18] sm:$0xff]  ;;  %441 = vmatpush.msra.mxu2 %v340_v6  ;;  %470 = vmatpush.msra.mxu3 %v341_v7  ;;  %v1829_v13 = vld [vmem:[#allocation5 + $0xa8] sm:$0xf]  ;;  %v2164_v14 = vld [vmem:[#allocation5 + $0xb0] sm:$0xf0]  ;;  %s1617_s21 = scalar_lea.hbm %s2822_s7, %s2238_s15 }
  0x2a   : > { %s2637_s13 = scalar_lea.vmem %s2815_s0, %s1726_s1  ;;  %384 = vmatpush.msra.mxu0 %v334_v8  ;;  %413 = vmatpush.msra.mxu1 %v335_v9  ;;  %v1830_v15 = vor.u32 %v2164_v14, %v1829_v13  ;;  %v1925_v16 = vld [vmem:[#allocation5 + $0x168] sm:$0xf]  ;;  %v2188_v17 = vld [vmem:[#allocation5 + $0x170] sm:$0xf0]  ;;  %v1817_v18 = vld [vmem:[#allocation5 + $0x90] sm:$0xf] }
  0x2b   : > { %v330_v12 = vld [vmem:[%s2637_s13] sm:$0xff]  ;;  %442 = vmatpush.msra.mxu2 %v336_v10  ;;  %471 = vmatpush.msra.mxu3 %v337_v11  ;;  %v1926_v19 = vor.u32 %v2188_v17, %v1925_v16  ;;  %v2161_v20 = vld [vmem:[#allocation5 + $0x98] sm:$0xf0]  ;;  %v1913_v21 = vld [vmem:[#allocation5 + $0x150] sm:$0xf]  ;;  %s1618_s3 = sshll.u32 %s2775_s14, 4  ;;  %s1619_s3 = int_to_ptr.vmem [resolvable:$true] %s1618_s3 }
  0x2c   : > { %1727 = vmatmul.msk.f32.vlgmr.msra.gmra.mxu0 %vm356_vm0, %v330_v12  ;;  %1731 = vmatmul.msk.f32.vlgmr.msra.gmra.mxu1 %vm356_vm0, %v330_v12  ;;  %v2185_v22 = vld [vmem:[#allocation5 + $0x158] sm:$0xf0]  ;;  %v2021_v23 = vld [vmem:[#allocation5 + $0x228] sm:$0xf]  ;;  %v2212_v24 = vld [vmem:[#allocation5 + $0x230] sm:$0xf0]  ;;  %v1818_v26 = vor.u32 %v2161_v20, %v1817_v18 }
  0x2d   : > { %1735 = vmatmul.msk.f32.vlgmr.msra.gmra.mxu2 %vm356_vm0, %v330_v12  ;;  %1739 = vmatmul.msk.f32.vlgmr.msra.gmra.mxu3 %vm356_vm0, %v330_v12  ;;  %v2117_v25 = vld [vmem:[#allocation5 + $0x2e8] sm:$0xf]  ;;  %v1914_v27 = vor.u32 %v2185_v22, %v1913_v21  ;;  %v2022_v28 = vor.u32 %v2212_v24, %v2021_v23  ;;  %v2236_v29 = vld [vmem:[#allocation5 + $0x2f0] sm:$0xf0]  ;;  %v1805_v30 = vld [vmem:[#allocation5 + $0x78] sm:$0xf] }
  0x2e   : > { %1157 = vmatpush.bf16.msrb.mxu0 %v1830_v15  ;;  %1176 = vmatpush.bf16.msrb.mxu1 %v1926_v19  ;;  %v2158_v31 = vld [vmem:[#allocation5 + $0x80] sm:$0xf0]  ;;  %v2118_v32 = vor.u32 %v2236_v29, %v2117_v25  ;;  %v1901_v33 = vld [vmem:[#allocation5 + $0x138] sm:$0xf]  ;;  %v2009_v35 = vld [vmem:[#allocation5 + $0x210] sm:$0xf] }
  0x2f   : > { %v2182_v34 = vld [vmem:[#allocation5 + $0x140] sm:$0xf0]  ;;  %1195 = vmatpush.bf16.msrb.mxu2 %v2022_v28  ;;  %v2209_v36 = vld [vmem:[#allocation5 + $0x218] sm:$0xf0]  ;;  %v2105_v37 = vld [vmem:[#allocation5 + $0x2d0] sm:$0xf]  ;;  %v1806_v40 = vor.u32 %v2158_v31, %v1805_v30 }
  0x30   : > { %v2233_v38 = vld [vmem:[#allocation5 + $0x2d8] sm:$0xf0]  ;;  %v331_v39 = vld [vmem:[%s2637_s13 + $0x8] sm:$0xff]  ;;  %1214 = vmatpush.bf16.msrb.mxu3 %v2118_v32  ;;  %v1902_v41 = vor.u32 %v2182_v34, %v1901_v33  ;;  %v1793_v42 = vld [vmem:[#allocation5 + $0x60] sm:$0xf]  ;;  %v2010_v45 = vor.u32 %v2209_v36, %v2009_v35  ;;  %s1620_s1 = sshll.u32 %s1617_s21, 4  ;;  %s1621_s1 = int_to_ptr.hbm [resolvable:$true] %s1620_s1 }
  0x31   : > { %v2155_v43 = vld [vmem:[#allocation5 + $0x68] sm:$0xf0]  ;;  %v1889_v44 = vld [vmem:[#allocation5 + $0x120] sm:$0xf]  ;;  %v2106_v46 = vor.u32 %v2233_v38, %v2105_v37  ;;  %v1997_v48 = vld [vmem:[#allocation5 + $0x1f8] sm:$0xf] }
  0x32   : > { %1158 = vmatpush.bf16.msrb.mxu0 %v1818_v26  ;;  %1177 = vmatpush.bf16.msrb.mxu1 %v1914_v27  ;;  %v2179_v47 = vld [vmem:[#allocation5 + $0x128] sm:$0xf0]  ;;  %v2206_v49 = vld [vmem:[#allocation5 + $0x200] sm:$0xf0]  ;;  %v2093_v50 = vld [vmem:[#allocation5 + $0x2b8] sm:$0xf]  ;;  %v1794_v52 = vor.u32 %v2155_v43, %v1793_v42 }
  0x33   : > { %v2230_v51 = vld [vmem:[#allocation5 + $0x2c0] sm:$0xf0]  ;;  %v1890_v53 = vor.u32 %v2179_v47, %v1889_v44  ;;  %1196 = vmatpush.bf16.msrb.mxu2 %v2010_v45  ;;  %v1998_v54 = vor.u32 %v2206_v49, %v1997_v48  ;;  %v332_v56 = vld [vmem:[%s2637_s13 + $0x10] sm:$0xff]  ;;  %v333_v57 = vld [vmem:[%s2637_s13 + $0x18] sm:$0xff]  ;;  %s1606_s26 = scalar_lea.sflag [#allocation4], %s320_s8  ;;  %s2436_s28 = sshra.s32 %s1621_s1, 4  ;;  %s2437_s28 = int_to_ptr.hbm [resolvable:$true] %s2436_s28 }
  0x34   : > { %1728 = vmatmul.msk.f32.gmra.mxu0 %vm356_vm0, %v331_v39  ;;  %1732 = vmatmul.msk.f32.gmra.mxu1 %vm356_vm0, %v331_v39  ;;  %v2094_v55 = vor.u32 %v2230_v51, %v2093_v50  ;;  %v1781_v58 = vld [vmem:[#allocation5 + $0x48] sm:$0xf]  ;;  %v2152_v59 = vld [vmem:[#allocation5 + $0x50] sm:$0xf0]  ;;  %v1985_v0 = vld [vmem:[#allocation5 + $0x1e0] sm:$0xf]  ;;  %p2443_p3 = scmp.lt.s32.totalorder %s2437_s28, %s2822_s7 }
  0x35   : > { %1736 = vmatmul.msk.f32.gmra.mxu2 %vm356_vm0, %v331_v39  ;;  %1740 = vmatmul.msk.f32.gmra.mxu3 %vm356_vm0, %v331_v39  ;;  %v1877_v60 = vld [vmem:[#allocation5 + $0x108] sm:$0xf]  ;;  %v1782_v61 = vor.u32 %v2152_v59, %v1781_v58  ;;  %v2176_v62 = vld [vmem:[#allocation5 + $0x110] sm:$0xf0]  ;;  %v2203_v1 = vld [vmem:[#allocation5 + $0x1e8] sm:$0xf0] }
  0x36   : > { %1159 = vmatpush.bf16.msrb.mxu0 %v1806_v40  ;;  %1178 = vmatpush.bf16.msrb.mxu1 %v1902_v41  ;;  %v1878_v63 = vor.u32 %v2176_v62, %v1877_v60  ;;  %v2081_v2 = vld [vmem:[#allocation5 + $0x2a0] sm:$0xf]  ;;  %v1986_v3 = vor.u32 %v2203_v1, %v1985_v0  ;;  %v2227_v4 = vld [vmem:[#allocation5 + $0x2a8] sm:$0xf0]  ;;  %v1769_v6 = vld [vmem:[#allocation5 + $0x30] sm:$0xf] }
  0x37   : > { %1215 = vmatpush.bf16.msrb.mxu3 %v2106_v46  ;;  %1197 = vmatpush.bf16.msrb.mxu2 %v1998_v54  ;;  %v2082_v5 = vor.u32 %v2227_v4, %v2081_v2  ;;  %v2149_v7 = vld [vmem:[#allocation5 + $0x38] sm:$0xf0]  ;;  %v1865_v8 = vld [vmem:[#allocation5 + $0xf0] sm:$0xf]  ;;  %v1973_v11 = vld [vmem:[#allocation5 + $0x1c8] sm:$0xf] }
  0x38   : > { %v1770_v9 = vor.u32 %v2149_v7, %v1769_v6  ;;  %v2173_v10 = vld [vmem:[#allocation5 + $0xf8] sm:$0xf0]  ;;  %v2200_v13 = vld [vmem:[#allocation5 + $0x1d0] sm:$0xf0]  ;;  %v2069_v14 = vld [vmem:[#allocation5 + $0x288] sm:$0xf] }
  0x39   : > { %v1866_v12 = vor.u32 %v2173_v10, %v1865_v8  ;;  %v2224_v15 = vld [vmem:[#allocation5 + $0x290] sm:$0xf0]  ;;  %v1974_v16 = vor.u32 %v2200_v13, %v1973_v11  ;;  %v1757_v18 = vld [vmem:[#allocation5 + $0x18] sm:$0xf]  ;;  %v2146_v19 = vld [vmem:[#allocation5 + $0x20] sm:$0xf0] }
  0x3a   : > { %1160 = vmatpush.bf16.msrb.mxu0 %v1794_v52  ;;  %1179 = vmatpush.bf16.msrb.mxu1 %v1890_v53  ;;  %v2070_v17 = vor.u32 %v2224_v15, %v2069_v14  ;;  %v1853_v20 = vld [vmem:[#allocation5 + $0xd8] sm:$0xf]  ;;  %v1758_v21 = vor.u32 %v2146_v19, %v1757_v18  ;;  %v2170_v22 = vld [vmem:[#allocation5 + $0xe0] sm:$0xf0]  ;;  %v1961_v24 = vld [vmem:[#allocation5 + $0x1b0] sm:$0xf] }
  0x3b   : > { %1216 = vmatpush.bf16.msrb.mxu3 %v2094_v55  ;;  %1198 = vmatpush.bf16.msrb.mxu2 %v1986_v3  ;;  %v1854_v23 = vor.u32 %v2170_v22, %v1853_v20  ;;  %v2197_v25 = vld [vmem:[#allocation5 + $0x1b8] sm:$0xf0]  ;;  %v2057_v27 = vld [vmem:[#allocation5 + $0x270] sm:$0xf]  ;;  %v1745_v30 = vld [vmem:[#allocation5] sm:$0xf] }
  0x3c   : > { %1729 = vmatmul.msk.f32.gmra.mxu0 %vm356_vm0, %v332_v56  ;;  %1733 = vmatmul.msk.f32.gmra.mxu1 %vm356_vm0, %v332_v56  ;;  %v1962_v26 = vor.u32 %v2197_v25, %v1961_v24  ;;  %v2221_v28 = vld [vmem:[#allocation5 + $0x278] sm:$0xf0]  ;;  %v2143_v31 = vld [vmem:[#allocation5 + $0x8] sm:$0xf0]  ;;  %v1841_v32 = vld [vmem:[#allocation5 + $0xc0] sm:$0xf] }
  0x3d   : > { %1737 = vmatmul.msk.f32.gmra.mxu2 %vm356_vm0, %v332_v56  ;;  %1741 = vmatmul.msk.f32.gmra.mxu3 %vm356_vm0, %v332_v56  ;;  %v2058_v29 = vor.u32 %v2221_v28, %v2057_v27  ;;  %v1746_v33 = vor.u32 %v2143_v31, %v1745_v30  ;;  %v2167_v34 = vld [vmem:[#allocation5 + $0xc8] sm:$0xf0]  ;;  %v1949_v36 = vld [vmem:[#allocation5 + $0x198] sm:$0xf]  ;;  %v2194_v37 = vld [vmem:[#allocation5 + $0x1a0] sm:$0xf0] }
  0x3e   : > { %1161 = vmatpush.bf16.msrb.mxu0 %v1782_v61  ;;  %1180 = vmatpush.bf16.msrb.mxu1 %v1878_v63  ;;  %v1842_v35 = vor.u32 %v2167_v34, %v1841_v32  ;;  %v2045_v38 = vld [vmem:[#allocation5 + $0x258] sm:$0xf]  ;;  %v1950_v39 = vor.u32 %v2194_v37, %v1949_v36  ;;  %v2218_v40 = vld [vmem:[#allocation5 + $0x260] sm:$0xf0]  ;;  %v2163_v42 = vld [vmem:[#allocation5 + $0xac] sm:$0xf] }
  0x3f   : > { %1217 = vmatpush.bf16.msrb.mxu3 %v2082_v5  ;;  %1199 = vmatpush.bf16.msrb.mxu2 %v1974_v16  ;;  %v2046_v41 = vor.u32 %v2218_v40, %v2045_v38  ;;  %v1831_v43 = vld [vmem:[#allocation5 + $0xb4] sm:$0xf0]  ;;  %v2187_v44 = vld [vmem:[#allocation5 + $0x16c] sm:$0xf]  ;;  %v1937_v48 = vld [vmem:[#allocation5 + $0x180] sm:$0xf] }
  0x40   : > { %v1834_v45 = vor.u32 %v2163_v42, %v1831_v43  ;;  %v1927_v46 = vld [vmem:[#allocation5 + $0x174] sm:$0xf0]  ;;  %v2191_v49 = vld [vmem:[#allocation5 + $0x188] sm:$0xf0]  ;;  %v2033_v50 = vld [vmem:[#allocation5 + $0x240] sm:$0xf] }
  0x41   : > { %v1930_v47 = vor.u32 %v2187_v44, %v1927_v46  ;;  %v1938_v51 = vor.u32 %v2191_v49, %v1937_v48  ;;  %v2215_v52 = vld [vmem:[#allocation5 + $0x248] sm:$0xf0]  ;;  %v2160_v54 = vld [vmem:[#allocation5 + $0x94] sm:$0xf]  ;;  %v1819_v55 = vld [vmem:[#allocation5 + $0x9c] sm:$0xf0] }
  0x42   : > { %1162 = vmatpush.bf16.msrb.mxu0 %v1770_v9  ;;  %1181 = vmatpush.bf16.msrb.mxu1 %v1866_v12  ;;  %v2034_v53 = vor.u32 %v2215_v52, %v2033_v50  ;;  %v2184_v56 = vld [vmem:[#allocation5 + $0x154] sm:$0xf]  ;;  %v1915_v58 = vld [vmem:[#allocation5 + $0x15c] sm:$0xf0]  ;;  %v2211_v60 = vld [vmem:[#allocation5 + $0x22c] sm:$0xf] }
  0x43   : > { %1218 = vmatpush.bf16.msrb.mxu3 %v2070_v17  ;;  %1200 = vmatpush.bf16.msrb.mxu2 %v1962_v26  ;;  %v1918_v59 = vor.u32 %v2184_v56, %v1915_v58  ;;  %v2023_v61 = vld [vmem:[#allocation5 + $0x234] sm:$0xf0]  ;;  %v2235_v62 = vld [vmem:[#allocation5 + $0x2ec] sm:$0xf]  ;;  %v2157_v2 = vld [vmem:[#allocation5 + $0x7c] sm:$0xf] }
  0x44   : > { %1730 = vmatmul.msk.f32.gmra.mxu0 %vm356_vm0, %v333_v57  ;;  %1734 = vmatmul.msk.f32.gmra.mxu1 %vm356_vm0, %v333_v57  ;;  %v2026_v63 = vor.u32 %v2211_v60, %v2023_v61  ;;  %v2119_v0 = vld [vmem:[#allocation5 + $0x2f4] sm:$0xf0]  ;;  %v1807_v3 = vld [vmem:[#allocation5 + $0x84] sm:$0xf0]  ;;  %v2181_v4 = vld [vmem:[#allocation5 + $0x13c] sm:$0xf] }
  0x45   : > { %1738 = vmatmul.msk.f32.gmra.mxu2 %vm356_vm0, %v333_v57  ;;  %1742 = vmatmul.msk.f32.gmra.mxu3 %vm356_vm0, %v333_v57  ;;  %v1822_v57 = vor.u32 %v2160_v54, %v1819_v55  ;;  %v2122_v1 = vor.u32 %v2235_v62, %v2119_v0  ;;  %v1810_v5 = vor.u32 %v2157_v2, %v1807_v3  ;;  %v1903_v6 = vld [vmem:[#allocation5 + $0x144] sm:$0xf0]  ;;  %v2208_v8 = vld [vmem:[#allocation5 + $0x214] sm:$0xf]  ;;  %v2011_v9 = vld [vmem:[#allocation5 + $0x21c] sm:$0xf0] }
  0x46   : > { %1163 = vmatpush.bf16.msrb.mxu0 %v1758_v21  ;;  %1182 = vmatpush.bf16.msrb.mxu1 %v1854_v23  ;;  %v1906_v7 = vor.u32 %v2181_v4, %v1903_v6  ;;  %v2232_v10 = vld [vmem:[#allocation5 + $0x2d4] sm:$0xf]  ;;  %v2014_v11 = vor.u32 %v2208_v8, %v2011_v9  ;;  %v2107_v12 = vld [vmem:[#allocation5 + $0x2dc] sm:$0xf0]  ;;  %v2154_v14 = vld [vmem:[#allocation5 + $0x64] sm:$0xf] }
  0x47   : > { %1219 = vmatpush.bf16.msrb.mxu3 %v2058_v29  ;;  %1201 = vmatpush.bf16.msrb.mxu2 %v1950_v39  ;;  %v2110_v13 = vor.u32 %v2232_v10, %v2107_v12  ;;  %v1795_v15 = vld [vmem:[#allocation5 + $0x6c] sm:$0xf0]  ;;  %v2178_v16 = vld [vmem:[#allocation5 + $0x124] sm:$0xf]  ;;  %v2662_v17 = vld [vmem:[%s2817_s2] sm:$0xf] }
  0x48   : > { %v1798_v18 = vor.u32 %v2154_v14, %v1795_v15  ;;  %v1891_v19 = vld [vmem:[#allocation5 + $0x12c] sm:$0xf0]  ;;  %v2205_v21 = vld [vmem:[#allocation5 + $0x1fc] sm:$0xf]  ;;  %v1999_v22 = vld [vmem:[#allocation5 + $0x204] sm:$0xf0] }
  0x49   : > { %v1894_v20 = vor.u32 %v2178_v16, %v1891_v19  ;;  %v2229_v23 = vld [vmem:[#allocation5 + $0x2bc] sm:$0xf]  ;;  %v2665_v24 = vperm.slane %v2662_v17, 0  ;;  %v2668_v25 = vperm.slane %v2662_v17, 1  ;;  %v2002_v26 = vor.u32 %v2205_v21, %v1999_v22  ;;  %v2095_v27 = vld [vmem:[#allocation5 + $0x2c4] sm:$0xf0] }
  0x4a   : > { %1164 = vmatpush.bf16.msrb.mxu0 %v1746_v33  ;;  %1183 = vmatpush.bf16.msrb.mxu1 %v1842_v35  ;;  %v2098_v28 = vor.u32 %v2229_v23, %v2095_v27  ;;  %v2151_v29 = vld [vmem:[#allocation5 + $0x4c] sm:$0xf]  ;;  %v1783_v30 = vld [vmem:[#allocation5 + $0x54] sm:$0xf0]  ;;  %v2202_v37 = vld [vmem:[#allocation5 + $0x1e4] sm:$0xf] }
  0x4b   : > { %1220 = vmatpush.bf16.msrb.mxu3 %v2046_v41  ;;  %1202 = vmatpush.bf16.msrb.mxu2 %v1938_v51  ;;  %v2175_v31 = vld [vmem:[#allocation5 + $0x10c] sm:$0xf]  ;;  %v1786_v32 = vor.u32 %v2151_v29, %v1783_v30  ;;  %v1879_v33 = vld [vmem:[#allocation5 + $0x114] sm:$0xf0]  ;;  %v1987_v38 = vld [vmem:[#allocation5 + $0x1ec] sm:$0xf0] }
  0x4c   : > { %v1882_v36 = vor.u32 %v2175_v31, %v1879_v33  ;;  %v2226_v39 = vld [vmem:[#allocation5 + $0x2a4] sm:$0xf]  ;;  %v1990_v42 = vor.u32 %v2202_v37, %v1987_v38  ;;  %v2083_v43 = vld [vmem:[#allocation5 + $0x2ac] sm:$0xf0]  ;;  %v1771_v46 = vld [vmem:[#allocation5 + $0x3c] sm:$0xf0] }
  0x4d   : > { %v2086_v44 = vor.u32 %v2226_v39, %v2083_v43  ;;  %v1867_v49 = vld [vmem:[#allocation5 + $0xfc] sm:$0xf0]  ;;  %v2199_v51 = vld [vmem:[#allocation5 + $0x1cc] sm:$0xf]  ;;  %v1975_v52 = vld [vmem:[#allocation5 + $0x1d4] sm:$0xf0] }
  0x4e   : > { %1233 = vmatpush.bf16.msra.mxu0 %v1834_v45  ;;  %1252 = vmatpush.bf16.msra.mxu1 %v1930_v47  ;;  %v2148_v45 = vld [vmem:[#allocation5 + $0x34] sm:$0xf]  ;;  %v2679_v56 = vperm.slane %v2662_v17, 2  ;;  %v2071_v58 = vld [vmem:[#allocation5 + $0x294] sm:$0xf0]  ;;  %s2438_s10 = scalar_lea.hbm %s2437_s28, 32 }
  0x4f   : > { %1221 = vmatpush.bf16.msrb.mxu3 %v2034_v53  ;;  %1271 = vmatpush.bf16.msra.mxu2 %v2026_v63  ;;  %v2172_v47 = vld [vmem:[#allocation5 + $0xf4] sm:$0xf]  ;;  %v1774_v48 = vor.u32 %v2148_v45, %v1771_v46  ;;  %v2223_v53 = vld [vmem:[#allocation5 + $0x28c] sm:$0xf]  ;;  %v2145_v60 = vld [vmem:[#allocation5 + $0x1c] sm:$0xf]  ;;  %p2439_p0 = scmp.ne.s32.totalorder %s2437_s28, %s2438_s10 }
  0x50   : > { %v1870_v50 = vor.u32 %v2172_v47, %v1867_v49  ;;  %v1759_v61 = vld [vmem:[#allocation5 + $0x24] sm:$0xf0]  ;;  %v2169_v62 = vld [vmem:[#allocation5 + $0xdc] sm:$0xf]  ;;  %v2196_v3 = vld [vmem:[#allocation5 + $0x1b4] sm:$0xf] }
  0x51   : > { %v1855_v2 = vld [vmem:[#allocation5 + $0xe4] sm:$0xf0]  ;;  %v1963_v4 = vld [vmem:[#allocation5 + $0x1bc] sm:$0xf0]  ;;  %v2220_v9 = vld [vmem:[#allocation5 + $0x274] sm:$0xf]  ;;  %p2440_p1 = pnand %p2439_p0, %p2585_p5 }
  0x52   : > { %1234 = vmatpush.bf16.msra.mxu0 %v1822_v57  ;;  %1253 = vmatpush.bf16.msra.mxu1 %v1918_v59  ;;  %v1978_v57 = vor.u32 %v2199_v51, %v1975_v52  ;;  %v2074_v59 = vor.u32 %v2223_v53, %v2071_v58  ;;  %v1966_v8 = vor.u32 %v2196_v3, %v1963_v4  ;;  %v2059_v10 = vld [vmem:[#allocation5 + $0x27c] sm:$0xf0]  ;;  %v1747_v16 = vld [vmem:[#allocation5 + $0xc] sm:$0xf0]  ;;  %v2193_v23 = vld [vmem:[#allocation5 + $0x19c] sm:$0xf] }
  0x53   : > { %1290 = vmatpush.bf16.msra.mxu3 %v2122_v1  ;;  %1272 = vmatpush.bf16.msra.mxu2 %v2014_v11  ;;  %v1762_v1 = vor.u32 %v2145_v60, %v1759_v61  ;;  %v2142_v11 = vld [vmem:[#allocation5 + $0x4] sm:$0xf]  ;;  %v2062_v15 = vor.u32 %v2220_v9, %v2059_v10  ;;  %v1843_v19 = vld [vmem:[#allocation5 + $0xcc] sm:$0xf0]  ;;  %v2217_v29 = vld [vmem:[#allocation5 + $0x25c] sm:$0xf]  ;;  %p2441_p2 = pneg %p2440_p1 }
  0x54   : > { %v1750_v21 = vor.u32 %v2142_v11, %v1747_v16  ;;  %v2047_v30 = vld [vmem:[#allocation5 + $0x264] sm:$0xf0]  ;;  %v2165_v37 = vld [vmem:[#allocation5 + $0xb8] sm:$0xf0]  ;;  %v1933_v38 = vld [vmem:[#allocation5 + $0x170] sm:$0xf] }
  0x55   : > { %v2190_v43 = vld [vmem:[#allocation5 + $0x184] sm:$0xf]  ;;  %v2035_v51 = vld [vmem:[#allocation5 + $0x24c] sm:$0xf0]  ;;  %v1825_v52 = vld [vmem:[#allocation5 + $0x98] sm:$0xf] }
  0x56   : > { %1235 = vmatpush.bf16.msra.mxu0 %v1810_v5  ;;  %1254 = vmatpush.bf16.msra.mxu1 %v1906_v7  ;;  %v1858_v7 = vor.u32 %v2169_v62, %v1855_v2  ;;  %v2162_v58 = vld [vmem:[#allocation5 + $0xa0] sm:$0xf0]  ;;  %v2029_v4 = vld [vmem:[#allocation5 + $0x230] sm:$0xf]  ;;  %v2237_v10 = vld [vmem:[#allocation5 + $0x2f8] sm:$0xf0] }
  0x57   : > { %1291 = vmatpush.bf16.msra.mxu3 %v2110_v13  ;;  %1273 = vmatpush.bf16.msra.mxu2 %v2002_v26  ;;  %v1951_v26 = vld [vmem:[#allocation5 + $0x1a4] sm:$0xf0]  ;;  %v2186_v60 = vld [vmem:[#allocation5 + $0x160] sm:$0xf0]  ;;  %s2442_s18 = scalar_lea.hbm %s2822_s7, 64 }
  0x58   : > { %v1954_v31 = vor.u32 %v2193_v23, %v1951_v26  ;;  %p2444_p4 = scmp.lt.s32.totalorder %s2442_s18, %s2438_s10 }
  0x5a   : > { %1236 = vmatpush.bf16.msra.mxu0 %v1798_v18  ;;  %1255 = vmatpush.bf16.msra.mxu1 %v1894_v20  ;;  %v2166_v18 = vld [vmem:[#allocation5 + $0xc4] sm:$0xf]  ;;  %v2687_v20 = vperm.slane %v2662_v17, 3  ;;  %p2445_p7 = por %p2444_p4, %p2443_p3 }
  0x5b   : > { %1292 = vmatpush.bf16.msra.mxu3 %v2098_v28  ;;  %1274 = vmatpush.bf16.msra.mxu2 %v1990_v42  ;;  %v1846_v22 = vor.u32 %v2166_v18, %v1843_v19  ;;  %v2189_v42 = vld [vmem:[#allocation5 + $0x178] sm:$0xf0]  ;;  %v2183_v19 = vld [vmem:[#allocation5 + $0x148] sm:$0xf0] }
  0x5c   : > { %v1934_v49 = vor.u32 %v2189_v42, %v1933_v38  ;;  %v1897_v38 = vld [vmem:[#allocation5 + $0x128] sm:$0xf]  ;;  %v2207_v42 = vld [vmem:[#allocation5 + $0x208] sm:$0xf0]  ;;  %p2446_p8 = pnand %p2445_p7, %p2441_p2 }
  0x5e   : > { %1237 = vmatpush.bf16.msra.mxu0 %v1786_v32  ;;  %1256 = vmatpush.bf16.msra.mxu1 %v1882_v36  ;;  %v2050_v32 = vor.u32 %v2217_v29, %v2047_v30  ;;  %v1837_v36 = vld [vmem:[#allocation5 + $0xb0] sm:$0xf]  ;;  %v2113_v29 = vld [vmem:[#allocation5 + $0x2d8] sm:$0xf]  ;;  %v2234_v30 = vld [vmem:[#allocation5 + $0x2e0] sm:$0xf0] }
  0x5f   : > { %1293 = vmatpush.bf16.msra.mxu3 %v2086_v44  ;;  %1275 = vmatpush.bf16.msra.mxu2 %v1978_v57  ;;  %v1939_v44 = vld [vmem:[#allocation5 + $0x18c] sm:$0xf0] }
  0x62   : > { %1238 = vmatpush.bf16.msra.mxu0 %v1774_v48  ;;  %1257 = vmatpush.bf16.msra.mxu1 %v1870_v50  ;;  %v2214_v50 = vld [vmem:[#allocation5 + $0x244] sm:$0xf] }
  0x63   : > { %1294 = vmatpush.bf16.msra.mxu3 %v2074_v59  ;;  %1276 = vmatpush.bf16.msra.mxu2 %v1966_v8  ;;  %v2038_v57 = vor.u32 %v2214_v50, %v2035_v51  ;;  %v1921_v59 = vld [vmem:[#allocation5 + $0x158] sm:$0xf] }
  0x66   : > { %1239 = vmatpush.bf16.msra.mxu0 %v1762_v1  ;;  %1258 = vmatpush.bf16.msra.mxu1 %v1858_v7  ;;  %v1922_v1 = vor.u32 %v2186_v60, %v1921_v59  ;;  %v2177_v59 = vld [vmem:[#allocation5 + $0x118] sm:$0xf0]  ;;  %v1993_v60 = vld [vmem:[#allocation5 + $0x1e8] sm:$0xf] }
  0x67   : > { %1295 = vmatpush.bf16.msra.mxu3 %v2062_v15  ;;  %1277 = vmatpush.bf16.msra.mxu2 %v1954_v31  ;;  %v1801_v31 = vld [vmem:[#allocation5 + $0x68] sm:$0xf] }
  0x6a   : > { %1240 = vmatpush.bf16.msra.mxu0 %v1750_v21  ;;  %1259 = vmatpush.bf16.msra.mxu1 %v1846_v22  ;;  %v2017_v21 = vld [vmem:[#allocation5 + $0x218] sm:$0xf]  ;;  %v2210_v22 = vld [vmem:[#allocation5 + $0x220] sm:$0xf0] }
  0x6b   : > { %1296 = vmatpush.bf16.msra.mxu3 %v2050_v32 }
  0x6f   : > { %1297 = vmatpush.bf16.msra.mxu3 %v2038_v57 }
  0xa9   : > { %v386_v34 = vpop.f32.mrf.mxu0  ;;  %v415_v35 = vpop.f32.mrf.mxu1 }
  0xaa   : > { %v2671_v40 = vadd.f32 %v386_v34, %v2665_v24  ;;  %v2674_v41 = vadd.f32 %v415_v35, %v2668_v25 }
  0xac   : > { %v485_v54 = vmax.f32 %v2671_v40, 0.0  ;;  %v486_v55 = vmax.f32 %v2674_v41, 0.0  ;;  %v1838_v41 = vor.u32 %v2165_v37, %v1837_v36  ;;  %v2114_v36 = vor.u32 %v2234_v30, %v2113_v29  ;;  %v2156_v37 = vld [vmem:[#allocation5 + $0x70] sm:$0xf0]  ;;  %v2171_v30 = vld [vmem:[#allocation5 + $0xe8] sm:$0xf0] }
  0xb0   : > { %v444_v63 = vpop.f32.mrf.mxu2  ;;  %v473_v0 = vpop.f32.mrf.mxu3 }
  0xb1   : > { %v389_v5 = vpop.f32.mrf.mxu0  ;;  %v418_v6 = vpop.f32.mrf.mxu1  ;;  %v2682_v12 = vadd.f32 %v444_v63, %v2679_v56  ;;  %v474_v17 = vadd.f32 %v473_v0, %v2687_v20  ;;  %v1826_v0 = vor.u32 %v2162_v58, %v1825_v52  ;;  %v1789_v52 = vld [vmem:[#allocation5 + $0x50] sm:$0xf] }
  0xb2   : > { %v390_v13 = vadd.f32 %v389_v5, %v2665_v24  ;;  %v419_v14 = vadd.f32 %v418_v6, %v2668_v25  ;;  %v2213_v5 = vld [vmem:[#allocation5 + $0x238] sm:$0xf0]  ;;  %v2125_v6 = vld [vmem:[#allocation5 + $0x2f0] sm:$0xf] }
  0xb3   : > { %v487_v33 = vmax.f32 %v2682_v12, 0.0  ;;  %v488_v61 = vmax.f32 %v474_v17, 0.0  ;;  %v2030_v9 = vor.u32 %v2213_v5, %v2029_v4  ;;  %v2126_v11 = vor.u32 %v2237_v10, %v2125_v6  ;;  %v1813_v12 = vld [vmem:[#allocation5 + $0x80] sm:$0xf]  ;;  %v2228_v4 = vld [vmem:[#allocation5 + $0x2b0] sm:$0xf0] }
  0xb4   : > { %v489_v27 = vmax.f32 %v390_v13, 0.0  ;;  %v490_v28 = vmax.f32 %v419_v14, 0.0  ;;  %v2159_v13 = vld [vmem:[#allocation5 + $0x88] sm:$0xf0]  ;;  %v1909_v14 = vld [vmem:[#allocation5 + $0x140] sm:$0xf] }
  0xb5   : > { %v1814_v18 = vor.u32 %v2159_v13, %v1813_v12  ;;  %v1777_v5 = vld [vmem:[#allocation5 + $0x38] sm:$0xf]  ;;  %v2174_v10 = vld [vmem:[#allocation5 + $0x100] sm:$0xf0] }
  0xb6   : > { %v2690_v34 = vpack.c.bf16 %v489_v27, %v485_v54  ;;  %v2692_v35 = vpack.c.bf16 %v490_v28, %v486_v55  ;;  %v1942_v55 = vor.u32 %v2190_v43, %v1939_v44  ;;  %v1910_v27 = vor.u32 %v2183_v19, %v1909_v14  ;;  %v2077_v19 = vld [vmem:[#allocation5 + $0x290] sm:$0xf] }
  0xb7   : > { %v2018_v28 = vor.u32 %v2210_v22, %v2017_v21  ;;  %v2225_v22 = vld [vmem:[#allocation5 + $0x298] sm:$0xf0] }
  0xb8   : > { %v447_v39 = vpop.f32.mrf.mxu2  ;;  %v476_v40 = vpop.f32.mrf.mxu3  ;;  %1165 = vmatmul.bf16.vlgmr.msrb.gmra.mxu0 %v2690_v34  ;;  %1184 = vmatmul.bf16.vlgmr.msrb.gmra.mxu1 %v2692_v35 }
  0xb9   : > { %v448_v45 = vadd.f32 %v447_v39, %v2679_v56  ;;  %v477_v46 = vadd.f32 %v476_v40, %v2687_v20  ;;  %v392_v47 = vpop.f32.mrf.mxu0  ;;  %v421_v48 = vpop.f32.mrf.mxu1  ;;  %1309 = vmatpush.bf16.msrb.mxu0 %v1838_v41  ;;  %1328 = vmatpush.bf16.msrb.mxu1 %v1934_v49  ;;  %v2180_v39 = vld [vmem:[#allocation5 + $0x130] sm:$0xf0]  ;;  %v1802_v40 = vor.u32 %v2156_v37, %v1801_v31  ;;  %v2005_v41 = vld [vmem:[#allocation5 + $0x200] sm:$0xf]  ;;  %v1969_v31 = vld [vmem:[#allocation5 + $0x1b8] sm:$0xf] }
  0xba   : > { %v2700_v53 = vadd.f32 %v392_v47, %v2665_v24  ;;  %v2703_v54 = vadd.f32 %v421_v48, %v2668_v25  ;;  %1278 = vmatpush.bf16.msra.mxu2 %v1942_v55  ;;  %v1898_v47 = vor.u32 %v2180_v39, %v1897_v38  ;;  %v2006_v48 = vor.u32 %v2207_v42, %v2005_v41  ;;  %v2222_v37 = vld [vmem:[#allocation5 + $0x280] sm:$0xf0]  ;;  %v1753_v38 = vld [vmem:[#allocation5 + $0x8] sm:$0xf]  ;;  %v2168_v42 = vld [vmem:[#allocation5 + $0xd0] sm:$0xf0] }
  0xbb   : > { %v491_v62 = vmax.f32 %v448_v45, 0.0  ;;  %v492_v63 = vmax.f32 %v477_v46, 0.0  ;;  %v2101_v45 = vld [vmem:[#allocation5 + $0x2c0] sm:$0xf]  ;;  %v2231_v46 = vld [vmem:[#allocation5 + $0x2c8] sm:$0xf0] }
  0xbc   : > { %v493_v7 = vmax.f32 %v2700_v53, 0.0  ;;  %v494_v8 = vmax.f32 %v2703_v54, 0.0  ;;  %v2102_v50 = vor.u32 %v2231_v46, %v2101_v45  ;;  %v2153_v53 = vld [vmem:[#allocation5 + $0x58] sm:$0xf0]  ;;  %v1885_v54 = vld [vmem:[#allocation5 + $0x110] sm:$0xf] }
  0xbd   : > { %v2705_v2 = vpack.c.bf16 %v491_v62, %v487_v33  ;;  %v2707_v3 = vpack.c.bf16 %v492_v63, %v488_v61  ;;  %1310 = vmatpush.bf16.msrb.mxu0 %v1826_v0  ;;  %1329 = vmatpush.bf16.msrb.mxu1 %v1922_v1  ;;  %v1790_v58 = vor.u32 %v2153_v53, %v1789_v52  ;;  %v2204_v61 = vld [vmem:[#allocation5 + $0x1f0] sm:$0xf0]  ;;  %v2089_v1 = vld [vmem:[#allocation5 + $0x2a8] sm:$0xf]  ;;  %v2195_v45 = vld [vmem:[#allocation5 + $0x1a8] sm:$0xf0] }
  0xbe   : > { %v1886_v0 = vor.u32 %v2177_v59, %v1885_v54  ;;  %v1994_v6 = vor.u32 %v2204_v61, %v1993_v60  ;;  %v1849_v41 = vld [vmem:[#allocation5 + $0xc8] sm:$0xf]  ;;  %v2053_v46 = vld [vmem:[#allocation5 + $0x260] sm:$0xf]  ;;  %v2192_v52 = vld [vmem:[#allocation5 + $0x190] sm:$0xf0] }
  0xbf   : > { %1203 = vmatmul.bf16.vlgmr.msrb.gmra.mxu2 %v2705_v2  ;;  %1222 = vmatmul.bf16.vlgmr.msrb.gmra.mxu3 %v2707_v3  ;;  %v2041_v53 = vld [vmem:[#allocation5 + $0x248] sm:$0xf]  ;;  %v1411_v59 = vld [vmem:[#allocation7 + $0x70] sm:$0xff]  ;;  %v1409_v61 = vld [vmem:[#allocation7 + $0x60] sm:$0xff] }
  0xc0   : > { %v450_v15 = vpop.f32.mrf.mxu2  ;;  %v479_v16 = vpop.f32.mrf.mxu3  ;;  %1347 = vmatpush.bf16.msrb.mxu2 %v2030_v9  ;;  %1366 = vmatpush.bf16.msrb.mxu3 %v2126_v11  ;;  %v1873_v9 = vld [vmem:[#allocation5 + $0xf8] sm:$0xf]  ;;  %v1410_v60 = vld [vmem:[#allocation7 + $0x68] sm:$0xff] }
  0xc1   : > { %v395_v23 = vpop.f32.mrf.mxu0  ;;  %v424_v26 = vpop.f32.mrf.mxu1  ;;  %v451_v32 = vadd.f32 %v450_v15, %v2679_v56  ;;  %1311 = vmatpush.bf16.msrb.mxu0 %v1814_v18  ;;  %1330 = vmatpush.bf16.msrb.mxu1 %v1910_v27  ;;  %v480_v51 = vadd.f32 %v479_v16, %v2687_v20  ;;  %v1874_v15 = vor.u32 %v2174_v10, %v1873_v9  ;;  %v1981_v16 = vld [vmem:[#allocation5 + $0x1d0] sm:$0xf]  ;;  %v2201_v18 = vld [vmem:[#allocation5 + $0x1d8] sm:$0xf0]  ;;  %v2147_v27 = vld [vmem:[#allocation5 + $0x28] sm:$0xf0] }
  0xc2   : > { %v396_v33 = vadd.f32 %v395_v23, %v2665_v24  ;;  %v425_v17 = vadd.f32 %v424_v26, %v2668_v25  ;;  %v1982_v21 = vor.u32 %v2201_v18, %v1981_v16  ;;  %v2078_v23 = vor.u32 %v2225_v22, %v2077_v19  ;;  %v1765_v26 = vld [vmem:[#allocation5 + $0x20] sm:$0xf]  ;;  %v1424_v10 = vld [vmem:[#allocation7 + $0xd8] sm:$0xff]  ;;  %v1419_v18 = vld [vmem:[#allocation7 + $0xb0] sm:$0xff] }
  0xc3   : > { %v495_v24 = vmax.f32 %v451_v32, 0.0  ;;  %v496_v11 = vmax.f32 %v480_v51, 0.0  ;;  %v1766_v29 = vor.u32 %v2147_v27, %v1765_v26  ;;  %v2198_v32 = vld [vmem:[#allocation5 + $0x1c0] sm:$0xf0]  ;;  %v1945_v51 = vld [vmem:[#allocation5 + $0x188] sm:$0xf] }
  0xc4   : > { %v497_v43 = vmax.f32 %v396_v33, 0.0  ;;  %v498_v44 = vmax.f32 %v425_v17, 0.0  ;;  %1348 = vmatpush.bf16.msrb.mxu2 %v2018_v28  ;;  %1367 = vmatpush.bf16.msrb.mxu3 %v2114_v36  ;;  %v1861_v28 = vld [vmem:[#allocation5 + $0xe0] sm:$0xf]  ;;  %v1970_v17 = vor.u32 %v2198_v32, %v1969_v31  ;;  %v2065_v36 = vld [vmem:[#allocation5 + $0x278] sm:$0xf]  ;;  %v1946_v54 = vor.u32 %v2192_v52, %v1945_v51 }
  0xc5   : > { %1312 = vmatpush.bf16.msrb.mxu0 %v1802_v40  ;;  %1331 = vmatpush.bf16.msrb.mxu1 %v1898_v47  ;;  %v1862_v33 = vor.u32 %v2171_v30, %v1861_v28  ;;  %v2066_v39 = vor.u32 %v2222_v37, %v2065_v36  ;;  %v2144_v40 = vld [vmem:[#allocation5 + $0x10] sm:$0xf0]  ;;  %v2219_v47 = vld [vmem:[#allocation5 + $0x268] sm:$0xf0]  ;;  %v1425_v9 = vld [vmem:[#allocation7 + $0xe0] sm:$0xff] }
  0xc6   : > { %v2716_v49 = vpack.c.bf16 %v497_v43, %v493_v7  ;;  %v2718_v25 = vpack.c.bf16 %v498_v44, %v494_v8  ;;  %v2090_v7 = vor.u32 %v2228_v4, %v2089_v1  ;;  %v2150_v8 = vld [vmem:[#allocation5 + $0x40] sm:$0xf0]  ;;  %v1754_v43 = vor.u32 %v2144_v40, %v1753_v38  ;;  %v1957_v44 = vld [vmem:[#allocation5 + $0x1a0] sm:$0xf]  ;;  %v1403_v1 = vld [vmem:[#allocation7 + $0x30] sm:$0xff] }
  0xc7   : > { %v1778_v14 = vor.u32 %v2150_v8, %v1777_v5  ;;  %v1402_v4 = vld [vmem:[#allocation7 + $0x28] sm:$0xff]  ;;  %v1397_v5 = vld [vmem:[#allocation7] sm:$0xff]  ;;  %v1420_v16 = vld [vmem:[#allocation7 + $0xb8] sm:$0xff] }
  0xc8   : > { %v453_v55 = vpop.f32.mrf.mxu2  ;;  %v482_v57 = vpop.f32.mrf.mxu3  ;;  %1170 = vmatmul.bf16.gmra.mxu0 %v2716_v49  ;;  %1189 = vmatmul.bf16.gmra.mxu1 %v2718_v25  ;;  %v1426_v8 = vld [vmem:[#allocation7 + $0xe8] sm:$0xff]  ;;  %v1417_v26 = vld [vmem:[#allocation7 + $0xa0] sm:$0xff]  ;;  %v1416_v28 = vld [vmem:[#allocation7 + $0x98] sm:$0xff] }
  0xc9   : > { %v454_v62 = vadd.f32 %v453_v55, %v2679_v56  ;;  %v483_v63 = vadd.f32 %v482_v57, %v2687_v20  ;;  %1349 = vmatpush.bf16.msrb.mxu2 %v2006_v48  ;;  %1368 = vmatpush.bf16.msrb.mxu3 %v2102_v50  ;;  %v1850_v48 = vor.u32 %v2168_v42, %v1849_v41  ;;  %v2216_v55 = vld [vmem:[#allocation5 + $0x250] sm:$0xf0]  ;;  %v1414_v38 = vld [vmem:[#allocation7 + $0x88] sm:$0xff]  ;;  %v1413_v40 = vld [vmem:[#allocation7 + $0x80] sm:$0xff] }
  0xca   : > { %1313 = vmatpush.bf16.msrb.mxu0 %v1790_v58  ;;  %1332 = vmatpush.bf16.msrb.mxu1 %v1886_v0  ;;  %v2054_v50 = vor.u32 %v2219_v47, %v2053_v46  ;;  %v2042_v57 = vor.u32 %v2216_v55, %v2041_v53  ;;  %v1412_v58 = vld [vmem:[#allocation7 + $0x78] sm:$0xff]  ;;  %v1406_v0 = vld [vmem:[#allocation7 + $0x48] sm:$0xff]  ;;  %v1415_v32 = vld [vmem:[#allocation7 + $0x90] sm:$0xff] }
  0xcb   : > { %v499_v12 = vmax.f32 %v454_v62, 0.0  ;;  %v500_v13 = vmax.f32 %v483_v63, 0.0  ;;  %v1408_v62 = vld [vmem:[#allocation7 + $0x58] sm:$0xff]  ;;  %v1407_v63 = vld [vmem:[#allocation7 + $0x50] sm:$0xff]  ;;  %v1442_v51 = vld [vmem:[#allocation7 + $0x168] sm:$0xff] }
  0xcc   : > { %v1444_v42 = vld [vmem:[#allocation7 + $0x178] sm:$0xff]  ;;  %v1443_v46 = vld [vmem:[#allocation7 + $0x170] sm:$0xff]  ;;  %v1441_v53 = vld [vmem:[#allocation7 + $0x160] sm:$0xff] }
  0xcd   : > { %v2725_v56 = vpack.c.bf16 %v499_v12, %v495_v24  ;;  %v2727_v20 = vpack.c.bf16 %v500_v13, %v496_v11  ;;  %1350 = vmatpush.bf16.msrb.mxu2 %v1994_v6  ;;  %1369 = vmatpush.bf16.msrb.mxu3 %v2090_v7  ;;  %v1958_v24 = vor.u32 %v2195_v45, %v1957_v44  ;;  %v1428_v6 = vld [vmem:[#allocation7 + $0xf8] sm:$0xff]  ;;  %v1427_v7 = vld [vmem:[#allocation7 + $0xf0] sm:$0xff] }
  0xce   : > { %1314 = vmatpush.bf16.msrb.mxu0 %v1778_v14  ;;  %1333 = vmatpush.bf16.msrb.mxu1 %v1874_v15  ;;  %v1423_v11 = vld [vmem:[#allocation7 + $0xd0] sm:$0xff]  ;;  %v1422_v14 = vld [vmem:[#allocation7 + $0xc8] sm:$0xff]  ;;  %v1440_v55 = vld [vmem:[#allocation7 + $0x158] sm:$0xff] }
  0xcf   : > { %1208 = vmatmul.bf16.gmra.mxu2 %v2725_v56  ;;  %1227 = vmatmul.bf16.gmra.mxu3 %v2727_v20 }
  0xd1   : > { %1351 = vmatpush.bf16.msrb.mxu2 %v1982_v21  ;;  %1370 = vmatpush.bf16.msrb.mxu3 %v2078_v23  ;;  %v1418_v23 = vld [vmem:[#allocation7 + $0xa8] sm:$0xff] }
  0xd2   : > { %1315 = vmatpush.bf16.msrb.mxu0 %v1766_v29  ;;  %1334 = vmatpush.bf16.msrb.mxu1 %v1862_v33 }
  0xd5   : > { %1352 = vmatpush.bf16.msrb.mxu2 %v1970_v17  ;;  %1371 = vmatpush.bf16.msrb.mxu3 %v2066_v39 }
  0xd6   : > { %1316 = vmatpush.bf16.msrb.mxu0 %v1754_v43  ;;  %1335 = vmatpush.bf16.msrb.mxu1 %v1850_v48 }
  0xd8   : > { %1241 = vmatmul.bf16.vlgmr.msra.gmra.mxu0 %v2690_v34  ;;  %1260 = vmatmul.bf16.vlgmr.msra.gmra.mxu1 %v2692_v35 }
  0xd9   : > { %1353 = vmatpush.bf16.msrb.mxu2 %v1958_v24  ;;  %1372 = vmatpush.bf16.msrb.mxu3 %v2054_v50 }
  0xda   : > { %1449 = vmatpush.msra.mxu0 %v1412_v58  ;;  %1478 = vmatpush.msra.mxu1 %v1428_v6 }
  0xdc   : > { %1450 = vmatpush.msra.mxu0 %v1411_v59  ;;  %1479 = vmatpush.msra.mxu1 %v1427_v7 }
  0xdd   : > { %1354 = vmatpush.bf16.msrb.mxu2 %v1946_v54  ;;  %1373 = vmatpush.bf16.msrb.mxu3 %v2042_v57 }
  0xde   : > { %1451 = vmatpush.msra.mxu0 %v1410_v60  ;;  %1480 = vmatpush.msra.mxu1 %v1426_v8  ;;  %v1439_v60 = vld [vmem:[#allocation7 + $0x150] sm:$0xff] }
  0xdf   : > { %1279 = vmatmul.bf16.vlgmr.msra.gmra.mxu2 %v2705_v2  ;;  %1298 = vmatmul.bf16.vlgmr.msra.gmra.mxu3 %v2707_v3 }
  0xe0   : > { %1452 = vmatpush.msra.mxu0 %v1409_v61  ;;  %1481 = vmatpush.msra.mxu1 %v1425_v9 }
  0xe1   : > { %1507 = vmatpush.msra.mxu2 %v1444_v42 }
  0xe2   : > { %1453 = vmatpush.msra.mxu0 %v1408_v62  ;;  %1482 = vmatpush.msra.mxu1 %v1424_v10 }
  0xe3   : > { %1508 = vmatpush.msra.mxu2 %v1443_v46 }
  0xe4   : > { %1454 = vmatpush.msra.mxu0 %v1407_v63  ;;  %1483 = vmatpush.msra.mxu1 %v1423_v11  ;;  %v1435_v11 = vld [vmem:[#allocation7 + $0x130] sm:$0xff] }
  0xe5   : > { %1509 = vmatpush.msra.mxu2 %v1442_v51 }
  0xe6   : > { %1455 = vmatpush.msra.mxu0 %v1406_v0  ;;  %1484 = vmatpush.msra.mxu1 %v1422_v14 }
  0xe7   : > { %1510 = vmatpush.msra.mxu2 %v1441_v53  ;;  %v2330_v53 = vld [vmem:[%s2637_s13 + $0x10] sm:$0xff] }
  0xe8   : > { %1246 = vmatmul.bf16.gmra.mxu0 %v2716_v49  ;;  %1265 = vmatmul.bf16.gmra.mxu1 %v2718_v25 }
  0xe9   : > { %1511 = vmatpush.msra.mxu2 %v1440_v55 }
  0xeb   : > { %1512 = vmatpush.msra.mxu2 %v1439_v60 }
  0xef   : > { %1284 = vmatmul.bf16.gmra.mxu2 %v2725_v56  ;;  %1303 = vmatmul.bf16.gmra.mxu3 %v2727_v20 }
  0xf8   : > { %1317 = vmatmul.bf16.vlgmr.msrb.gmra.mxu0 %v2690_v34  ;;  %1336 = vmatmul.bf16.vlgmr.msrb.gmra.mxu1 %v2692_v35  ;;  %v1405_v34 = vld [vmem:[#allocation7 + $0x40] sm:$0xff]  ;;  %v1404_v35 = vld [vmem:[#allocation7 + $0x38] sm:$0xff] }
  0xf9   : > { %1456 = vmatpush.msra.mxu0 %v1405_v34  ;;  %v1438_v34 = vld [vmem:[#allocation7 + $0x148] sm:$0xff] }
  0xfa   : > { %1513 = vmatpush.msra.mxu2 %v1438_v34  ;;  %v2331_v34 = vld [vmem:[%s2637_s13 + $0x18] sm:$0xff] }
  0xfb   : > { %1457 = vmatpush.msra.mxu0 %v1404_v35 }
  0xfd   : > { %1458 = vmatpush.msra.mxu0 %v1403_v1  ;;  %v1544_v1 = vlaneseq }
  0xff   : > { %1355 = vmatmul.bf16.vlgmr.msrb.gmra.mxu2 %v2705_v2  ;;  %1374 = vmatmul.bf16.vlgmr.msrb.gmra.mxu3 %v2707_v3  ;;  %v1401_v2 = vld [vmem:[#allocation7 + $0x20] sm:$0xff]  ;;  %v1400_v3 = vld [vmem:[#allocation7 + $0x18] sm:$0xff] }
 0x100   : > { %1459 = vmatpush.msra.mxu0 %v1402_v4  ;;  %v1437_v4 = vld [vmem:[#allocation7 + $0x140] sm:$0xff] }
 0x101   : > { %1514 = vmatpush.msra.mxu2 %v1437_v4 }
 0x102   : > { %1460 = vmatpush.msra.mxu0 %v1401_v2 }
 0x104   : > { %1461 = vmatpush.msra.mxu0 %v1400_v3 }
 0x108   : > { %1322 = vmatmul.bf16.gmra.mxu0 %v2716_v49  ;;  %1341 = vmatmul.bf16.gmra.mxu1 %v2718_v25  ;;  %v1399_v49 = vld [vmem:[#allocation7 + $0x10] sm:$0xff]  ;;  %v1398_v25 = vld [vmem:[#allocation7 + $0x8] sm:$0xff] }
 0x109   : > { %1462 = vmatpush.msra.mxu0 %v1399_v49  ;;  %v1545_v49 = vshrl.u32 %v1544_v1, 7 }
 0x10b   : > { %1463 = vmatpush.msra.mxu0 %v1398_v25  ;;  %v1549_v25 = vand.u32 127, %v1544_v1  ;;  %v1547_v9 = vadd.s32 16, %v1545_v49 }
 0x10d   : > { %1464 = vmatpush.msra.mxu0 %v1397_v5  ;;  %v1436_v5 = vld [vmem:[#allocation7 + $0x138] sm:$0xff]  ;;  %v1550_v10 = vadd.s32 16, %v1549_v25 }
 0x10e   : > { %1515 = vmatpush.msra.mxu2 %v1436_v5 }
 0x10f   : > { %1360 = vmatmul.bf16.gmra.mxu2 %v2725_v56  ;;  %1379 = vmatmul.bf16.gmra.mxu3 %v2727_v20  ;;  %v2750_v56 = vld [vmem:[%s2819_s4] sm:$0x7]  ;;  %vm1553_vm1 = vcmp.eq.s32.totalorder %v1547_v9, %v1550_v10 }
 0x110   : > { %v1421_v20 = vld [vmem:[#allocation7 + $0xc0] sm:$0xff]  ;;  %v639_v15 = vperm.slane %v2750_v56, 0  ;;  %v2754_v3 = vperm.slane %v2750_v56, 1  ;;  %1516 = vmatpush.msra.mxu2 %v1435_v11  ;;  %v641_v60 = vperm.slane %v2750_v56, 2 }
 0x111   : > { %1485 = vmatpush.msra.mxu1 %v1421_v20 }
 0x113   : > { %1486 = vmatpush.msra.mxu1 %v1420_v16  ;;  %v2503_v16 = vmov 1.0  }
 0x114   : > { %2128 = vmatpush.msk.msra.mxu3 %vm1553_vm1, %v2503_v16 }
 0x115   : > { %1487 = vmatpush.msra.mxu1 %v1419_v18 }
 0x117   : > { %1488 = vmatpush.msra.mxu1 %v1418_v23  ;;  %v1432_v23 = vld [vmem:[#allocation7 + $0x118] sm:$0xff] }
 0x119   : > { %1489 = vmatpush.msra.mxu1 %v1417_v26 }
 0x11b   : > { %1490 = vmatpush.msra.mxu1 %v1416_v28 }
 0x11d   : > { %1491 = vmatpush.msra.mxu1 %v1415_v32 }
 0x11f   : > { %1492 = vmatpush.msra.mxu1 %v1414_v38  ;;  %v1429_v38 = vld [vmem:[#allocation7 + $0x100] sm:$0xff] }
 0x121   : > { %1493 = vmatpush.msra.mxu1 %v1413_v40 }
 0x135   : > { %v1166_v12 = vpop.f32.mrf.mxu0  ;;  %v1185_v13 = vpop.f32.mrf.mxu1 }
 0x136   : > { %v1167_v19 = vadd.f32 %v1166_v12, %v639_v15 }
 0x138   : > { %v1186_v27 = vadd.f32 %v1185_v13, %v1167_v19  ;;  %v1433_v19 = vld [vmem:[#allocation7 + $0x120] sm:$0xff] }
 0x13d   : > { %v1168_v21 = vpop.f32.mrf.mxu0  ;;  %v1187_v22 = vpop.f32.mrf.mxu1 }
 0x13e   : > { %v1169_v33 = vadd.f32 %v1168_v21, %v639_v15 }
 0x140   : > { %v1188_v41 = vadd.f32 %v1187_v22, %v1169_v33  ;;  %v2504_v22 = vmov 0.0  }
 0x141   : > { %1574 = vmatpush.msra.mxu3 %v2504_v22 }
 0x142   : > { %v1204_v29 = vpop.f32.mrf.mxu2  ;;  %v1223_v30 = vpop.f32.mrf.mxu3 }
 0x143   : > { %v1205_v31 = vadd.f32 %v1204_v29, %v1186_v27  ;;  %v1431_v29 = vld [vmem:[#allocation7 + $0x110] sm:$0xff]  ;;  %1575 = vmatpush.msra.mxu3 %v2504_v22 }
 0x145   : > { %v1224_v17 = vadd.f32 %v1223_v30, %v1205_v31  ;;  %v1171_v36 = vpop.f32.mrf.mxu0  ;;  %v1190_v37 = vpop.f32.mrf.mxu1  ;;  %v2328_v30 = vld [vmem:[%s2637_s13] sm:$0xff] }
 0x146   : > { %v1172_v47 = vadd.f32 %v1171_v36, %v639_v15  ;;  %2129 = vmatmul.msk.f32.vlgmr.msra.gmra.mxu3 %vm356_vm0, %v2328_v30  ;;  %v1430_v36 = vld [vmem:[#allocation7 + $0x108] sm:$0xff] }
 0x147   : > { %v1385_v39 = vmax.f32 %v1224_v17, 0.0 }
 0x148   : > { %v1191_v54 = vadd.f32 %v1190_v37, %v1172_v47 }
 0x149   : > { %1465 = vmatmul.f32.vlgmr.msra.gmra.mxu0 %v1385_v39 }
 0x14a   : > { %v1206_v43 = vpop.f32.mrf.mxu2  ;;  %v1225_v44 = vpop.f32.mrf.mxu3 }
 0x14b   : > { %v1207_v45 = vadd.f32 %v1206_v43, %v1188_v41  ;;  %v2329_v43 = vld [vmem:[%s2637_s13 + $0x8] sm:$0xff] }
 0x14d   : > { %v1226_v48 = vadd.f32 %v1225_v44, %v1207_v45  ;;  %v1173_v24 = vpop.f32.mrf.mxu0  ;;  %v1192_v50 = vpop.f32.mrf.mxu1 }
 0x14e   : > { %v1174_v61 = vadd.f32 %v1173_v24, %v639_v15  ;;  %v1434_v15 = vld [vmem:[#allocation7 + $0x128] sm:$0xff]  ;;  %2130 = vmatmul.msk.f32.gmra.mxu3 %vm356_vm0, %v2329_v43 }
 0x14f   : > { %v1388_v52 = vmax.f32 %v1226_v48, 0.0  ;;  %1517 = vmatpush.msra.mxu2 %v1434_v15 }
 0x150   : > { %v1193_v2 = vadd.f32 %v1192_v50, %v1174_v61 }
 0x151   : > { %1468 = vmatmul.f32.gmra.mxu0 %v1388_v52  ;;  %1518 = vmatpush.msra.mxu2 %v1433_v19 }
 0x152   : > { %v1209_v57 = vpop.f32.mrf.mxu2  ;;  %v1228_v58 = vpop.f32.mrf.mxu3 }
 0x153   : > { %v1210_v59 = vadd.f32 %v1209_v57, %v1191_v54  ;;  %1519 = vmatpush.msra.mxu2 %v1432_v23 }
 0x155   : > { %v1229_v62 = vadd.f32 %v1228_v58, %v1210_v59  ;;  %v1242_v63 = vpop.f32.mrf.mxu0  ;;  %v1261_v0 = vpop.f32.mrf.mxu1  ;;  %1520 = vmatpush.msra.mxu2 %v1431_v29 }
 0x156   : > { %v1243_v12 = vadd.f32 %v1242_v63, %v2754_v3  ;;  %2131 = vmatmul.msk.f32.gmra.mxu3 %vm356_vm0, %v2330_v53 }
 0x157   : > { %v1391_v35 = vmax.f32 %v1229_v62, 0.0  ;;  %1521 = vmatpush.msra.mxu2 %v1430_v36 }
 0x158   : > { %v1262_v21 = vadd.f32 %v1261_v0, %v1243_v12 }
 0x159   : > { %1471 = vmatmul.f32.gmra.mxu0 %v1391_v35  ;;  %1522 = vmatpush.msra.mxu2 %v1429_v38 }
 0x15a   : > { %v1211_v6 = vpop.f32.mrf.mxu2  ;;  %v1230_v7 = vpop.f32.mrf.mxu3 }
 0x15b   : > { %v1212_v8 = vadd.f32 %v1211_v6, %v1193_v2 }
 0x15d   : > { %v1231_v13 = vadd.f32 %v1230_v7, %v1212_v8  ;;  %v1244_v14 = vpop.f32.mrf.mxu0  ;;  %v1263_v20 = vpop.f32.mrf.mxu1 }
 0x15e   : > { %v1245_v31 = vadd.f32 %v1244_v14, %v2754_v3  ;;  %2132 = vmatmul.msk.f32.gmra.mxu3 %vm356_vm0, %v2331_v34 }
 0x15f   : > { %v1394_v18 = vmax.f32 %v1231_v13, 0.0 }
 0x160   : > { %v1264_v39 = vadd.f32 %v1263_v20, %v1245_v31 }
 0x161   : > { %1474 = vmatmul.f32.gmra.mxu0 %v1394_v18 }
 0x162   : > { %v1280_v26 = vpop.f32.mrf.mxu2  ;;  %v1299_v27 = vpop.f32.mrf.mxu3 }
 0x163   : > { %v1281_v28 = vadd.f32 %v1280_v26, %v1262_v21 }
 0x165   : > { %v1300_v32 = vadd.f32 %v1299_v27, %v1281_v28  ;;  %v1247_v33 = vpop.f32.mrf.mxu0  ;;  %v1266_v17 = vpop.f32.mrf.mxu1 }
 0x166   : > { %v1248_v44 = vadd.f32 %v1247_v33, %v2754_v3 }
 0x167   : > { %v1386_v37 = vmax.f32 %v1300_v32, 0.0 }
 0x168   : > { %v1267_v24 = vadd.f32 %v1266_v17, %v1248_v44 }
 0x169   : > { %1494 = vmatmul.f32.vlgmr.msra.gmra.mxu1 %v1386_v37 }
 0x16a   : > { %v1282_v40 = vpop.f32.mrf.mxu2  ;;  %v1301_v41 = vpop.f32.mrf.mxu3 }
 0x16b   : > { %v1283_v42 = vadd.f32 %v1282_v40, %v1264_v39  ;;  %v2319_v39 = vld [vmem:[%s2821_s6] ss:$0 sm:$0xff] }
 0x16d   : > { %v1302_v45 = vadd.f32 %v1301_v41, %v1283_v42  ;;  %v1249_v46 = vpop.f32.mrf.mxu0  ;;  %v1268_v48 = vpop.f32.mrf.mxu1 }
 0x16e   : > { %v1250_v54 = vadd.f32 %v1249_v46, %v2754_v3 }
 0x16f   : > { %v1389_v47 = vmax.f32 %v1302_v45, 0.0 }
 0x170   : > { %v1269_v59 = vadd.f32 %v1268_v48, %v1250_v54 }
 0x171   : > { %1497 = vmatmul.f32.gmra.mxu1 %v1389_v47 }
 0x172   : > { %v1285_v50 = vpop.f32.mrf.mxu2  ;;  %v1304_v51 = vpop.f32.mrf.mxu3 }
 0x173   : > { %v1286_v52 = vadd.f32 %v1285_v50, %v1267_v24 }
 0x175   : > { %v1305_v55 = vadd.f32 %v1304_v51, %v1286_v52  ;;  %v1318_v57 = vpop.f32.mrf.mxu0  ;;  %v1337_v61 = vpop.f32.mrf.mxu1 }
 0x176   : > { %v1319_v35 = vadd.f32 %v1318_v57, %v641_v60 }
 0x177   : > { %v1392_v58 = vmax.f32 %v1305_v55, 0.0 }
 0x178   : > { %v1338_v49 = vadd.f32 %v1337_v61, %v1319_v35 }
 0x179   : > { %1500 = vmatmul.f32.gmra.mxu1 %v1392_v58 }
 0x17a   : > { %v1287_v62 = vpop.f32.mrf.mxu2  ;;  %v1306_v63 = vpop.f32.mrf.mxu3 }
 0x17b   : > { %v1288_v0 = vadd.f32 %v1287_v62, %v1269_v59 }
 0x17d   : > { %v1307_v1 = vadd.f32 %v1306_v63, %v1288_v0  ;;  %v1320_v4 = vpop.f32.mrf.mxu0  ;;  %v1339_v6 = vpop.f32.mrf.mxu1 }
 0x17e   : > { %v1321_v7 = vadd.f32 %v1320_v4, %v641_v60 }
 0x17f   : > { %v1395_v2 = vmax.f32 %v1307_v1, 0.0 }
 0x180   : > { %v1340_v10 = vadd.f32 %v1339_v6, %v1321_v7 }
 0x181   : > { %1503 = vmatmul.f32.gmra.mxu1 %v1395_v2 }
 0x182   : > { %v1356_v3 = vpop.f32.mrf.mxu2  ;;  %v1375_v25 = vpop.f32.mrf.mxu3 }
 0x183   : > { %v1357_v5 = vadd.f32 %v1356_v3, %v1338_v49 }
 0x185   : > { %v1376_v56 = vadd.f32 %v1375_v25, %v1357_v5  ;;  %v1323_v9 = vpop.f32.mrf.mxu0  ;;  %v1342_v15 = vpop.f32.mrf.mxu1 }
 0x186   : > { %v1324_v14 = vadd.f32 %v1323_v9, %v641_v60 }
 0x187   : > { %v1387_v8 = vmax.f32 %v1376_v56, 0.0 }
 0x188   : > { %v1343_v18 = vadd.f32 %v1342_v15, %v1324_v14 }
 0x189   : > { %1523 = vmatmul.f32.vlgmr.msra.gmra.mxu2 %v1387_v8 }
 0x18a   : > { %v1358_v11 = vpop.f32.mrf.mxu2  ;;  %v1377_v12 = vpop.f32.mrf.mxu3 }
 0x18b   : > { %v1359_v13 = vadd.f32 %v1358_v11, %v1340_v10 }
 0x18d   : > { %v1378_v20 = vadd.f32 %v1377_v12, %v1359_v13  ;;  %v1325_v19 = vpop.f32.mrf.mxu0  ;;  %v1344_v29 = vpop.f32.mrf.mxu1 }
 0x18e   : > { %v1326_v26 = vadd.f32 %v1325_v19, %v641_v60 }
 0x18f   : > { %v1390_v16 = vmax.f32 %v1378_v20, 0.0 }
 0x190   : > { %v1345_v30 = vadd.f32 %v1344_v29, %v1326_v26 }
 0x191   : > { %1526 = vmatmul.f32.gmra.mxu2 %v1390_v16 }
 0x192   : > { %v1361_v21 = vpop.f32.mrf.mxu2  ;;  %v1380_v22 = vpop.f32.mrf.mxu3 }
 0x193   : > { %v1362_v23 = vadd.f32 %v1361_v21, %v1343_v18 }
 0x195   : > { %v1381_v27 = vadd.f32 %v1380_v22, %v1362_v23 }
 0x197   : > { %v1393_v28 = vmax.f32 %v1381_v27, 0.0 }
 0x199   : > { %1529 = vmatmul.f32.gmra.mxu2 %v1393_v28 }
 0x19a   : > { %v1363_v31 = vpop.f32.mrf.mxu2  ;;  %v1382_v33 = vpop.f32.mrf.mxu3 }
 0x19b   : > { %v1364_v32 = vadd.f32 %v1363_v31, %v1345_v30 }
 0x19d   : > { %v1383_v17 = vadd.f32 %v1382_v33, %v1364_v32 }
 0x19f   : > { %v1396_v36 = vmax.f32 %v1383_v17, 0.0 }
 0x1a1   : > { %1532 = vmatmul.f32.gmra.mxu2 %v1396_v36 }
 0x1c6   : > { %v1466_v37 = vpop.f32.mrf.mxu0 }
 0x1c7   : > { %v1467_v40 = vadd.f32 %v2319_v39, %v1466_v37 }
 0x1c9   : > { %v1577_v46 = vpop.f32.mrf.mxu3 }
 0x1ce   : > { %v1469_v41 = vpop.f32.mrf.mxu0 }
 0x1cf   : > { %v1470_v47 = vadd.f32 %v2319_v39, %v1469_v41 }
 0x1d1   : > { %v1580_v58 = vpop.f32.mrf.mxu3 }
 0x1d6   : > { %v1472_v24 = vpop.f32.mrf.mxu0 }
 0x1d7   : > { %v1473_v57 = vadd.f32 %v2319_v39, %v1472_v24 }
 0x1d9   : > { %v1583_v3 = vpop.f32.mrf.mxu3 }
 0x1de   : > { %v1475_v0 = vpop.f32.mrf.mxu0 }
 0x1df   : > { %v1476_v4 = vadd.f32 %v2319_v39, %v1475_v0 }
 0x1e1   : > { %v1586_v10 = vpop.f32.mrf.mxu3 }
 0x1e6   : > { %v1495_v38 = vpop.f32.mrf.mxu1 }
 0x1e7   : > { %v1496_v42 = vadd.f32 %v1495_v38, %v1467_v40 }
 0x1ee   : > { %v1498_v43 = vpop.f32.mrf.mxu1 }
 0x1ef   : > { %v1499_v48 = vadd.f32 %v1498_v43, %v1470_v47 }
 0x1f6   : > { %v1501_v53 = vpop.f32.mrf.mxu1 }
 0x1f7   : > { %v1502_v60 = vadd.f32 %v1501_v53, %v1473_v57 }
 0x1fe   : > { %v1504_v35 = vpop.f32.mrf.mxu1 }
 0x1ff   : > { %v1505_v49 = vadd.f32 %v1504_v35, %v1476_v4 }
 0x20c   : > { %v1524_v44 = vpop.f32.mrf.mxu2 }
 0x20d   : > { %v1525_v45 = vadd.f32 %v1524_v44, %v1496_v42 }
 0x20f   : > { %2320 = vtanh.f32 %v1525_v45 }
 0x214   : > { %v1527_v50 = vpop.f32.mrf.mxu2 }
 0x215   : > { %v2321_v51 = vpop.eup %2320  ;;  %v1528_v52 = vadd.f32 %v1527_v50, %v1499_v48 }
 0x216   : > { %v1540_v54 = vmul.f32 0.05, %v2321_v51 }
 0x217   : > { %2322 = vtanh.f32 %v1528_v52 }
 0x218   : > { %v1589_v55 = vadd.f32 %v1577_v46, %v1540_v54 }
 0x21a   : > { %v2133_v59 = vclamps-f32 %v1589_v55, 1.0 }
 0x21c   : > { %1601 = vst [vmem:[%s2775_s14] sm:$0xff] %v2133_v59  ;;  %v1530_v61 = vpop.f32.mrf.mxu2 }
 0x21d   : > { %v2323_v62 = vpop.eup %2322  ;;  %v1531_v63 = vadd.f32 %v1530_v61, %v1502_v60 }
 0x21e   : > { %v1541_v34 = vmul.f32 0.05, %v2323_v62 }
 0x21f   : > { %2324 = vtanh.f32 %v1531_v63 }
 0x220   : > { %v1590_v1 = vadd.f32 %v1580_v58, %v1541_v34 }
 0x222   : > { %v2134_v2 = vclamps-f32 %v1590_v1, 1.0 }
 0x224   : > { %1602 = vst [vmem:[%s2775_s14 + $0x8] sm:$0xff] %v2134_v2  ;;  %v1533_v25 = vpop.f32.mrf.mxu2 }
 0x225   : > { %v2325_v5 = vpop.eup %2324  ;;  %v1534_v6 = vadd.f32 %v1533_v25, %v1505_v49 }
 0x226   : > { %v1542_v7 = vmul.f32 0.05, %v2325_v5 }
 0x227   : > { %2326 = vtanh.f32 %v1534_v6 }
 0x228   : > { %v1591_v56 = vadd.f32 %v1583_v3, %v1542_v7 }
 0x22a   : > { %v2135_v8 = vclamps-f32 %v1591_v56, 1.0 }
 0x22c   : > { %1603 = vst [vmem:[%s2775_s14 + $0x10] sm:$0xff] %v2135_v8 }
 0x22d   : > { %v2327_v9 = vpop.eup %2326 }
 0x22e   : > { %v1543_v11 = vmul.f32 0.05, %v2327_v9 }
 0x230   : > { %v1592_v12 = vadd.f32 %v1586_v10, %v1543_v11 }
 0x232   : > { %v2136_v13 = vclamps-f32 %v1592_v12, 1.0 }
 0x234   : > { %1604 = vst [vmem:[%s2775_s14 + $0x18] sm:$0xff] %v2136_v13 }
 0x235   : > { %2449 = shalt.err (!%p2446_p8)
}
 0x236   : > { %s2505_s23 = smov 128   ;;  %s2506_s29 = smov 8  }
 0x237   : > { %2251 = dma.vmem_to_hbm [thread:$0]  (%p2585_p5), %s1619_s3, 512, %s1621_s1, %s1606_s26, %s2505_s23, %s2505_s23, %s2506_s29  }
 0x238 PF: > { %p2273_p9 = scmp.ge.s32.totalorder %s2492_s27, 2  ;;  %s1635_s8 = sand.u32 1, %s2480_s24  }
 0x239   : > { %s1636_s9 = scalar_lea.sflag [#allocation4], %s1635_s8 }
 0x23a   : > { %p2264_p10 = pnand %p2273_p9, %p2589_p6 }
 0x23c   : > { %p2265_p11 = pneg %p2264_p10 }
 0x23e   : > { %2475 = dma.done.wait (%p2265_p11), %s1636_s9, 512  }
 0x23f   : > { %2477 = vsyncadd (%p2265_p11), %s1636_s9, 4294966784  ;;  %s2834_s14 = sld [smem:[#allocation12_spill]]  ;;  %p19_p12 = scmp.ge.s32.totalorder %s2572_s30, 4  }
 0x240   : > { %s2835_s26 = sld [smem:[#allocation13_spill]]  ;;  %s2836_s24 = smov %s2484_s25 }
 0x241   : > { %s2838_s27 = smov %s2572_s30  ;;  %21 = sbr.rel (!%p19_p12) target bundleno = 8 (0x8), region = 96 }
 0x245   : > { %s2837_s25 = smov %s2834_s14 }
 0x246   :  { %1642 = vsyncpa [#allocation3], 1 }
 0x247   :  { %1644 = vsyncpa [#allocation3 + $0x1], 1 }
 0x248   :  { %1645 = vsyncpa [#allocation6], 1 }
 0x249   :  { %1646 = vsyncpa [#allocation4], 1 }
 0x24a   :  { %1648 = vsyncpa [#allocation4 + $0x1], 1 }

</bundles_post_ra>
